<compile_context>
chip_gen: v7x
topology: tpu7x:2x2x1
jax: 0.10.0
libtpu: 0.0.40
codegen_flags: <defaults>
</compile_context>

<pallas_src>
import functools

import jax
import jax.numpy as jnp
from jax.experimental import pallas as pl
from jax.experimental.pallas import tpu as pltpu

_LANE = 128      # f32 lanes per vreg
_SUBLANE = 8     # f32 sublanes per vreg


def _round_up(n, m):
    return (n + m - 1) // m * m


def _pad_to(a, shape):
    return jnp.pad(a, [(0, s - d) for d, s in zip(a.shape, shape)])


def _pick_time_chunk(seq, max_chunk=16):
    for c in range(min(seq, max_chunk), 0, -1):
        if seq % c == 0:
            return c
    return 1


# ----------------------------------------------------------------------------
# Kernel 1: hoisted layer-0 input projection — one big lane-dense GEMM over all
# timesteps, parallel grid (no serial dependence).
# ----------------------------------------------------------------------------
def _input_proj_kernel(x_ref, w_ref, b_ref, out_ref, *, mxu_dtype):
    x = x_ref[...].astype(mxu_dtype)
    out_ref[...] = (
        jnp.dot(x, w_ref[...], preferred_element_type=jnp.float32)
        + b_ref[...]
    )


def _input_projection(x_rows, w_in0, b0, *, seq, b_pad, t_chunk):
    rows, in_dim = x_rows.shape
    h_pad = w_in0.shape[1]
    block_rows = t_chunk * b_pad
    kernel = functools.partial(_input_proj_kernel, mxu_dtype=w_in0.dtype)
    out = pl.pallas_call(
        kernel,
        out_shape=jax.ShapeDtypeStruct((rows, h_pad), jnp.float32),
        grid=(rows // block_rows,),
        in_specs=[
            pl.BlockSpec((block_rows, in_dim), lambda i: (i, 0)),
            pl.BlockSpec((in_dim, h_pad), lambda i: (0, 0)),
            pl.BlockSpec((1, h_pad), lambda i: (0, 0)),
        ],
        out_specs=pl.BlockSpec((block_rows, h_pad), lambda i: (i, 0)),
        compiler_params=pltpu.CompilerParams(
            dimension_semantics=("parallel",)),
    )(x_rows, w_in0, b0)
    return out.reshape(seq, b_pad, h_pad)


# ----------------------------------------------------------------------------
# Kernel 2: fused multi-layer recurrence + BatchNorm + Linear head.
# Hidden states live in VMEM scratch for the whole sequence; T_CHUNK timesteps
# are processed per grid step; the head runs only on the final grid step.
# ----------------------------------------------------------------------------
def _fused_rnn_head_kernel(
    pre0_ref, w_hh_ref, w_ih_ref, b_ref,
    gamma_ref, beta_ref, fcw_ref, fcb_ref,
    out_ref, h_scratch,
    *, num_layers, batch, t_chunk, mxu_dtype,
):
    gt = pl.program_id(0)

    @pl.when(gt == 0)
    def _init():
        h_scratch[...] = jnp.zeros_like(h_scratch)     # h0 = 0 (all layers)

    def _step(i, carry):
        # Layer 0: consumes the precomputed input projection (already + bias).
        h_prev = h_scratch[0]
        pre = pre0_ref[i] + jnp.dot(
            h_prev.astype(mxu_dtype), w_hh_ref[0],
            preferred_element_type=jnp.float32)
        h_new = jnp.tanh(pre)
        h_scratch[0] = h_new
        inp = h_new
        # Layers 1..L-1: input is the previous layer's fresh hidden state.
        for l in range(1, num_layers):
            h_prev_l = h_scratch[l]
            pre_l = (
                jnp.dot(inp.astype(mxu_dtype), w_ih_ref[l - 1],
                        preferred_element_type=jnp.float32)
                + jnp.dot(h_prev_l.astype(mxu_dtype), w_hh_ref[l],
                          preferred_element_type=jnp.float32)
                + b_ref[l - 1]
            )
            h_new_l = jnp.tanh(pre_l)
            h_scratch[l] = h_new_l
            inp = h_new_l
        return carry

    jax.lax.fori_loop(0, t_chunk, _step, 0, unroll=True)

    # Fused head on the very last timestep only: BatchNorm1d (batch stats,
    # biased var, eps=1e-5) + Linear(H -> 1) as VPU mul + lane reduction.
    @pl.when(gt == pl.num_programs(0) - 1)
    def _head():
        h_last = h_scratch[num_layers - 1]                     # (B_pad, H_pad)
        row = jax.lax.broadcasted_iota(jnp.int32, h_last.shape, 0)
        mask = (row < batch).astype(jnp.float32)               # mask padded rows
        inv_b = jnp.float32(1.0 / batch)
        xm = h_last * mask
        mean = jnp.sum(xm, axis=0, keepdims=True) * inv_b
        diff = (h_last - mean) * mask
        var = jnp.sum(diff * diff, axis=0, keepdims=True) * inv_b
        xn = (h_last - mean) * jax.lax.rsqrt(var + 1e-5)
        y = xn * gamma_ref[...] + beta_ref[...]
        # Padded lanes contribute 0 because fc_w is zero-padded.
        z = jnp.sum(y * fcw_ref[...], axis=-1, keepdims=True) + fcb_ref[0, 0]
        out_ref[...] = jnp.broadcast_to(z, out_ref.shape)      # lane-dense store


def _fused_rnn_head(pre0, prep, *, batch, t_chunk):
    seq, b_pad, h_pad = pre0.shape
    num_layers = prep["w_hh"].shape[0]
    kernel = functools.partial(
        _fused_rnn_head_kernel,
        num_layers=num_layers, batch=batch, t_chunk=t_chunk,
        mxu_dtype=prep["w_hh"].dtype,
    )
    # Explicit VMEM budget (resident weights + double-buffered pre0 chunk +
    # scratch + output) with headroom; clamped so it is safe on v7x's 64 MiB.
    weight_bytes = (
        prep["w_hh"].size * prep["w_hh"].dtype.itemsize
        + prep["w_ih_rest"].size * prep["w_ih_rest"].dtype.itemsize
        + prep["b_rest"].size * 4
    )
    chunk_bytes = t_chunk * b_pad * h_pad * 4
    scratch_bytes = num_layers * b_pad * h_pad * 4
    est = 2 * chunk_bytes + 2 * weight_bytes + scratch_bytes + b_pad * _LANE * 4
    vmem_limit = int(min(max(est + (8 << 20), 16 << 20), 48 << 20))

    return pl.pallas_call(
        kernel,
        out_shape=jax.ShapeDtypeStruct((b_pad, _LANE), jnp.float32),
        grid=(seq // t_chunk,),
        in_specs=[
            pl.BlockSpec((t_chunk, b_pad, h_pad), lambda t: (t, 0, 0)),
            pl.BlockSpec(prep["w_hh"].shape, lambda t: (0, 0, 0)),
            pl.BlockSpec(prep["w_ih_rest"].shape, lambda t: (0, 0, 0)),
            pl.BlockSpec(prep["b_rest"].shape, lambda t: (0, 0, 0)),
            pl.BlockSpec(prep["bn_gamma"].shape, lambda t: (0, 0)),
            pl.BlockSpec(prep["bn_beta"].shape, lambda t: (0, 0)),
            pl.BlockSpec(prep["fc_w"].shape, lambda t: (0, 0)),
            pl.BlockSpec(memory_space=pltpu.MemorySpace.SMEM),   # fc bias scalar
        ],
        out_specs=pl.BlockSpec((b_pad, _LANE), lambda t: (0, 0)),
        scratch_shapes=[pltpu.VMEM((num_layers, b_pad, h_pad), jnp.float32)],
        compiler_params=pltpu.CompilerParams(
            dimension_semantics=("arbitrary",),
            vmem_limit_bytes=vmem_limit,
        ),
    )(pre0, prep["w_hh"], prep["w_ih_rest"], prep["b_rest"],
      prep["bn_gamma"], prep["bn_beta"], prep["fc_w"], prep["fc_b"])


# ----------------------------------------------------------------------------
# Parameter preparation (done ONCE, outside the jitted forward):
# transpose, combine biases, zero-pad to (8, 128)-aligned shapes, stack layers.
# ----------------------------------------------------------------------------
def prepare_params(params, *, input_size, hidden_size, num_layers,
                   mxu_dtype=jnp.float32):
    h_pad = _round_up(hidden_size, _LANE)
    w_ih0, w_hh0, b_ih0, b_hh0 = params["rnn"][0]
    prep = {
        "w_in0": _pad_to(w_ih0.T, (input_size, h_pad)).astype(mxu_dtype),
        "b0": _pad_to((b_ih0 + b_hh0).reshape(1, -1), (1, h_pad))
              .astype(jnp.float32),
        "w_hh": jnp.stack(
            [_pad_to(params["rnn"][l][1].T, (h_pad, h_pad))
             for l in range(num_layers)]).astype(mxu_dtype),
    }
    if num_layers > 1:
        prep["w_ih_rest"] = jnp.stack(
            [_pad_to(params["rnn"][l][0].T, (h_pad, h_pad))
             for l in range(1, num_layers)]).astype(mxu_dtype)
        prep["b_rest"] = jnp.stack(
            [_pad_to((params["rnn"][l][2] + params["rnn"][l][3]).reshape(1, -1),
                     (1, h_pad))
             for l in range(1, num_layers)]).astype(jnp.float32)
    else:
        prep["w_ih_rest"] = jnp.zeros((1, h_pad, h_pad), mxu_dtype)
        prep["b_rest"] = jnp.zeros((1, 1, h_pad), jnp.float32)
    prep["bn_gamma"] = _pad_to(params["bn_gamma"].reshape(1, -1), (1, h_pad))
    prep["bn_beta"] = _pad_to(params["bn_beta"].reshape(1, -1), (1, h_pad))
    prep["fc_w"] = _pad_to(params["fc_w"].reshape(1, -1), (1, h_pad))
    prep["fc_b"] = params["fc_b"].reshape(1, 1).astype(jnp.float32)
    return prep


# ----------------------------------------------------------------------------
# Full forward wrapper.
# ----------------------------------------------------------------------------
@functools.partial(jax.jit, static_argnames=("time_chunk",))
def vanilla_rnn_forward(x, prep, time_chunk=None):
    batch, seq, input_size = x.shape
    b_pad = _round_up(batch, _SUBLANE)
    t_chunk = time_chunk or _pick_time_chunk(seq)
    assert seq % t_chunk == 0, (seq, t_chunk)
    # (B, S, I) -> (S, B_pad, I), zero-padding the extra batch rows.
    x_sb = jnp.transpose(x, (1, 0, 2)).astype(jnp.float32)
    x_sb = jnp.pad(x_sb, ((0, 0), (0, b_pad - batch), (0, 0)))
    x_rows = x_sb.reshape(seq * b_pad, input_size)
    pre0 = _input_projection(x_rows, prep["w_in0"], prep["b0"],
                             seq=seq, b_pad=b_pad, t_chunk=t_chunk)
    out_pad = _fused_rnn_head(pre0, prep, batch=batch, t_chunk=t_chunk)
    return out_pad[:batch, :1]                                  # (batch, 1)


# ----------------------------------------------------------------------------
# Deterministic parameter init matching PyTorch parameter shapes / defaults.
# ----------------------------------------------------------------------------
def init_params(key, input_size, hidden_size, num_layers):
    params = {"rnn": []}
    bound = 1.0 / jnp.sqrt(hidden_size)
    for layer in range(num_layers):
        in_dim = input_size if layer == 0 else hidden_size
        key, k1, k2, k3, k4 = jax.random.split(key, 5)
        w_ih = jax.random.uniform(k1, (hidden_size, in_dim), jnp.float32,
                                  -bound, bound)
        w_hh = jax.random.uniform(k2, (hidden_size, hidden_size), jnp.float32,
                                  -bound, bound)
        b_ih = jax.random.uniform(k3, (hidden_size,), jnp.float32, -bound, bound)
        b_hh = jax.random.uniform(k4, (hidden_size,), jnp.float32, -bound, bound)
        params["rnn"].append((w_ih, w_hh, b_ih, b_hh))
    key, k5, k6 = jax.random.split(key, 3)
    params["bn_gamma"] = jnp.ones((hidden_size,), jnp.float32)
    params["bn_beta"] = jnp.zeros((hidden_size,), jnp.float32)
    params["fc_w"] = jax.random.uniform(k5, (1, hidden_size), jnp.float32,
                                        -bound, bound)
    params["fc_b"] = jax.random.uniform(k6, (1,), jnp.float32, -bound, bound)
    return params


def _reference_forward(x, params):
    """Pure-JAX (XLA) reference of the PyTorch forward, for a sanity check."""
    batch, seq, _ = x.shape
    num_layers = len(params["rnn"])
    hidden = params["rnn"][0][1].shape[0]
    hs = [jnp.zeros((batch, hidden), jnp.float32) for _ in range(num_layers)]
    for t in range(seq):
        inp = x[:, t, :]
        for l in range(num_layers):
            w_ih, w_hh, b_ih, b_hh = params["rnn"][l]
            hs[l] = jnp.tanh(inp @ w_ih.T + b_ih + hs[l] @ w_hh.T + b_hh)
            inp = hs[l]
    last = hs[-1]
    mean = jnp.mean(last, axis=0, keepdims=True)
    var = jnp.mean((last - mean) ** 2, axis=0, keepdims=True)
    xn = (last - mean) / jnp.sqrt(var + 1e-5)
    y = xn * params["bn_gamma"] + params["bn_beta"]
    return y @ params["fc_w"].T + params["fc_b"]


if __name__ == "__main__":
    batch, seq, input_size, hidden_size, num_layers = 4, 8, 16, 32, 2

    key = jax.random.PRNGKey(0)
    kx, kp = jax.random.split(key)
    x = jax.random.normal(kx, (batch, seq, input_size), jnp.float32)
    params = init_params(kp, input_size, hidden_size, num_layers)

    # Use mxu_dtype=jnp.bfloat16 here on v6e/v7x for 2x MXU throughput;
    # default f32 keeps bit-level parity with the PyTorch-style reference.
    prep = prepare_params(params, input_size=input_size,
                          hidden_size=hidden_size, num_layers=num_layers)

    out = vanilla_rnn_forward(x, prep, time_chunk=4)
    out = jax.block_until_ready(out)
    assert out.shape == (batch, 1), out.shape

    # Sanity check vs. pure-JAX reference.  Loose tolerance: default MXU
    # precision noise is amplified by the train-mode BatchNorm normalization.
    ref = jax.block_until_ready(_reference_forward(x, params))
    err = float(jnp.max(jnp.abs(out - ref)))
    assert err < 5e-2, f"max abs err {err}"

    print("KERNEL_OK")
</pallas_src>

<mosaic_0001>
module attributes {stable_mosaic.version = 11 : i64} {
  func.func @_input_proj_kernel(%arg0: i32, %arg1: memref<32x16xf32, #tpu.memory_space<vmem>>, %arg2: memref<16x128xf32, #tpu.memory_space<vmem>>, %arg3: memref<1x128xf32, #tpu.memory_space<vmem>>, %arg4: memref<32x128xf32, #tpu.memory_space<vmem>>) attributes {dimension_semantics = [#tpu.dimension_semantics<parallel>], iteration_bounds = array<i64: 2>, scalar_prefetch = 0 : i64, scratch_operands = 0 : i64, tpu.core_type = #tpu.core_type<tc>, window_params = [{transform_indices = @transform_0, window_bounds = array<i64: 32, 16>}, {pipeline_mode = #tpu.pipeline_mode<synchronous>, transform_indices = @transform_1, window_bounds = array<i64: 16, 128>}, {pipeline_mode = #tpu.pipeline_mode<synchronous>, transform_indices = @transform_2, window_bounds = array<i64: 1, 128>}, {transform_indices = @transform_3, window_bounds = array<i64: 32, 128>}]} {
    %c0 = arith.constant 0 : index
    %c0_0 = arith.constant 0 : index
    %0 = vector.load %arg1[%c0, %c0_0] : memref<32x16xf32, #tpu.memory_space<vmem>>, vector<32x16xf32>
    %c0_1 = arith.constant 0 : index
    %c0_2 = arith.constant 0 : index
    %1 = vector.load %arg2[%c0_1, %c0_2] : memref<16x128xf32, #tpu.memory_space<vmem>>, vector<16x128xf32>
    %cst = arith.constant dense<0.000000e+00> : vector<32x128xf32>
    %2 = tpu.matmul %0, %1, %cst {dimension_numbers = #tpu.dot_dimension_numbers<[1], [0], [0], [1], [0, 0, 1, 1], [], []>} : vector<32x16xf32>, vector<16x128xf32>, vector<32x128xf32> -> vector<32x128xf32>
    %c0_3 = arith.constant 0 : index
    %c0_4 = arith.constant 0 : index
    %3 = vector.load %arg3[%c0_3, %c0_4] : memref<1x128xf32, #tpu.memory_space<vmem>>, vector<1x128xf32>
    %4 = vector.broadcast %3 : vector<1x128xf32> to vector<32x128xf32>
    %5 = arith.addf %2, %4 : vector<32x128xf32>
    %c0_5 = arith.constant 0 : index
    %c0_6 = arith.constant 0 : index
    %6 = vector.load %arg4[%c0_5, %c0_6] : memref<32x128xf32, #tpu.memory_space<vmem>>, vector<32x128xf32>
    tpu.vector_store %arg4[%c0_5, %c0_6], %5 {strides = array<i32>} : memref<32x128xf32, #tpu.memory_space<vmem>>, vector<32x128xf32>,
    return
  }
  func.func @transform_0(%arg0: i32) -> (i32, i32) {
    %c0_i32 = arith.constant 0 : i32
    %c0_i32_0 = arith.constant 0 : i32
    return %arg0, %c0_i32 : i32, i32
  }
  func.func @transform_1(%arg0: i32) -> (i32, i32) {
    %c0_i32 = arith.constant 0 : i32
    %c0_i32_0 = arith.constant 0 : i32
    %c0_i32_1 = arith.constant 0 : i32
    return %c0_i32, %c0_i32_0 : i32, i32
  }
  func.func @transform_2(%arg0: i32) -> (i32, i32) {
    %c0_i32 = arith.constant 0 : i32
    %c0_i32_0 = arith.constant 0 : i32
    %c0_i32_1 = arith.constant 0 : i32
    return %c0_i32, %c0_i32_0 : i32, i32
  }
  func.func @transform_3(%arg0: i32) -> (i32, i32) {
    %c0_i32 = arith.constant 0 : i32
    %c0_i32_0 = arith.constant 0 : i32
    return %arg0, %c0_i32 : i32, i32
  }
}

module attributes {stable_mosaic.version = 11 : i64} {
  func.func @_fused_rnn_head_kernel(%arg0: i32, %arg1: memref<4x8x128xf32, #tpu.memory_space<vmem>>, %arg2: memref<2x128x128xf32, #tpu.memory_space<vmem>>, %arg3: memref<1x128x128xf32, #tpu.memory_space<vmem>>, %arg4: memref<1x1x128xf32, #tpu.memory_space<vmem>>, %arg5: memref<1x128xf32, #tpu.memory_space<vmem>>, %arg6: memref<1x128xf32, #tpu.memory_space<vmem>>, %arg7: memref<1x128xf32, #tpu.memory_space<vmem>>, %arg8: memref<1x1xf32, #tpu.memory_space<smem>>, %arg9: memref<8x128xf32, #tpu.memory_space<vmem>>, %arg10: memref<2x8x128xf32, #tpu.memory_space<vmem>>) attributes {dimension_semantics = [#tpu.dimension_semantics<arbitrary>], iteration_bounds = array<i64: 2>, scalar_prefetch = 0 : i64, scratch_operands = 1 : i64, tpu.core_type = #tpu.core_type<tc>, window_params = [{transform_indices = @transform_0, window_bounds = array<i64: 4, 8, 128>}, {pipeline_mode = #tpu.pipeline_mode<synchronous>, transform_indices = @transform_1, window_bounds = array<i64: 2, 128, 128>}, {pipeline_mode = #tpu.pipeline_mode<synchronous>, transform_indices = @transform_2, window_bounds = array<i64: 1, 128, 128>}, {pipeline_mode = #tpu.pipeline_mode<synchronous>, transform_indices = @transform_3, window_bounds = array<i64: 1, 1, 128>}, {pipeline_mode = #tpu.pipeline_mode<synchronous>, transform_indices = @transform_4, window_bounds = array<i64: 1, 128>}, {pipeline_mode = #tpu.pipeline_mode<synchronous>, transform_indices = @transform_5, window_bounds = array<i64: 1, 128>}, {pipeline_mode = #tpu.pipeline_mode<synchronous>, transform_indices = @transform_6, window_bounds = array<i64: 1, 128>}, {transform_indices = @transform_7, window_bounds = array<i64: 1, 1>}, {pipeline_mode = #tpu.pipeline_mode<synchronous>, transform_indices = @transform_8, window_bounds = array<i64: 8, 128>}]} {
    %c0_i32 = arith.constant 0 : i32
    %0 = arith.cmpi eq, %arg0, %c0_i32 : i32
    %1 = arith.extui %0 : i1 to i32
    %c0_i32_0 = arith.constant 0 : i32
    %2 = arith.cmpi ne, %1, %c0_i32_0 : i32
    scf.if %2 {
      %cst_117 = arith.constant 0.000000e+00 : f32
      %126 = vector.broadcast %cst_117 : f32 to vector<2x8x128xf32>
      %c0_118 = arith.constant 0 : index
      %c0_119 = arith.constant 0 : index
      %c0_120 = arith.constant 0 : index
      %127 = vector.load %arg10[%c0_118, %c0_119, %c0_120] : memref<2x8x128xf32, #tpu.memory_space<vmem>>, vector<2x8x128xf32>
      tpu.vector_store %arg10[%c0_118, %c0_119, %c0_120], %126 {strides = array<i32>} : memref<2x8x128xf32, #tpu.memory_space<vmem>>, vector<2x8x128xf32>,
    } else {
    }
    %c0_i32_1 = arith.constant 0 : i32
    %c0 = arith.constant 0 : index
    %c0_2 = arith.constant 0 : index
    %c0_3 = arith.constant 0 : index
    %3 = vector.load %arg10[%c0, %c0_2, %c0_3] : memref<2x8x128xf32, #tpu.memory_space<vmem>>, vector<1x8x128xf32>
    %4 = vector.shape_cast %3 : vector<1x8x128xf32> to vector<8x128xf32>
    %5 = arith.index_cast %c0_i32_1 : i32 to index
    %c0_4 = arith.constant 0 : index
    %c0_5 = arith.constant 0 : index
    %6 = vector.load %arg1[%5, %c0_4, %c0_5] : memref<4x8x128xf32, #tpu.memory_space<vmem>>, vector<1x8x128xf32>
    %7 = vector.shape_cast %6 : vector<1x8x128xf32> to vector<8x128xf32>
    %c0_6 = arith.constant 0 : index
    %c0_7 = arith.constant 0 : index
    %c0_8 = arith.constant 0 : index
    %8 = vector.load %arg2[%c0_6, %c0_7, %c0_8] : memref<2x128x128xf32, #tpu.memory_space<vmem>>, vector<1x128x128xf32>
    %9 = vector.shape_cast %8 : vector<1x128x128xf32> to vector<128x128xf32>
    %cst = arith.constant dense<0.000000e+00> : vector<8x128xf32>
    %10 = tpu.matmul %4, %9, %cst {dimension_numbers = #tpu.dot_dimension_numbers<[1], [0], [0], [1], [0, 0, 1, 1], [], []>} : vector<8x128xf32>, vector<128x128xf32>, vector<8x128xf32> -> vector<8x128xf32>
    %11 = arith.addf %7, %10 : vector<8x128xf32>
    %12 = math.tanh %11 : vector<8x128xf32>
    %c0_9 = arith.constant 0 : index
    %c0_10 = arith.constant 0 : index
    %c0_11 = arith.constant 0 : index
    %13 = vector.load %arg10[%c0_9, %c0_10, %c0_11] : memref<2x8x128xf32, #tpu.memory_space<vmem>>, vector<1x8x128xf32>
    %14 = vector.shape_cast %13 : vector<1x8x128xf32> to vector<8x128xf32>
    %15 = vector.shape_cast %12 : vector<8x128xf32> to vector<1x8x128xf32>
    tpu.vector_store %arg10[%c0_9, %c0_10, %c0_11], %15 {strides = array<i32>} : memref<2x8x128xf32, #tpu.memory_space<vmem>>, vector<1x8x128xf32>,
    %c1 = arith.constant 1 : index
    %c0_12 = arith.constant 0 : index
    %c0_13 = arith.constant 0 : index
    %16 = vector.load %arg10[%c1, %c0_12, %c0_13] : memref<2x8x128xf32, #tpu.memory_space<vmem>>, vector<1x8x128xf32>
    %17 = vector.shape_cast %16 : vector<1x8x128xf32> to vector<8x128xf32>
    %c0_14 = arith.constant 0 : index
    %c0_15 = arith.constant 0 : index
    %c0_16 = arith.constant 0 : index
    %18 = vector.load %arg3[%c0_14, %c0_15, %c0_16] : memref<1x128x128xf32, #tpu.memory_space<vmem>>, vector<1x128x128xf32>
    %19 = vector.shape_cast %18 : vector<1x128x128xf32> to vector<128x128xf32>
    %cst_17 = arith.constant dense<0.000000e+00> : vector<8x128xf32>
    %20 = tpu.matmul %12, %19, %cst_17 {dimension_numbers = #tpu.dot_dimension_numbers<[1], [0], [0], [1], [0, 0, 1, 1], [], []>} : vector<8x128xf32>, vector<128x128xf32>, vector<8x128xf32> -> vector<8x128xf32>
    %c1_18 = arith.constant 1 : index
    %c0_19 = arith.constant 0 : index
    %c0_20 = arith.constant 0 : index
    %21 = vector.load %arg2[%c1_18, %c0_19, %c0_20] : memref<2x128x128xf32, #tpu.memory_space<vmem>>, vector<1x128x128xf32>
    %22 = vector.shape_cast %21 : vector<1x128x128xf32> to vector<128x128xf32>
    %cst_21 = arith.constant dense<0.000000e+00> : vector<8x128xf32>
    %23 = tpu.matmul %17, %22, %cst_21 {dimension_numbers = #tpu.dot_dimension_numbers<[1], [0], [0], [1], [0, 0, 1, 1], [], []>} : vector<8x128xf32>, vector<128x128xf32>, vector<8x128xf32> -> vector<8x128xf32>
    %24 = arith.addf %20, %23 : vector<8x128xf32>
    %c0_22 = arith.constant 0 : index
    %c0_23 = arith.constant 0 : index
    %c0_24 = arith.constant 0 : index
    %25 = vector.load %arg4[%c0_22, %c0_23, %c0_24] : memref<1x1x128xf32, #tpu.memory_space<vmem>>, vector<1x1x128xf32>
    %26 = vector.shape_cast %25 : vector<1x1x128xf32> to vector<1x128xf32>
    %27 = vector.broadcast %26 : vector<1x128xf32> to vector<8x128xf32>
    %28 = arith.addf %24, %27 : vector<8x128xf32>
    %29 = math.tanh %28 : vector<8x128xf32>
    %c1_25 = arith.constant 1 : index
    %c0_26 = arith.constant 0 : index
    %c0_27 = arith.constant 0 : index
    %30 = vector.load %arg10[%c1_25, %c0_26, %c0_27] : memref<2x8x128xf32, #tpu.memory_space<vmem>>, vector<1x8x128xf32>
    %31 = vector.shape_cast %30 : vector<1x8x128xf32> to vector<8x128xf32>
    %32 = vector.shape_cast %29 : vector<8x128xf32> to vector<1x8x128xf32>
    tpu.vector_store %arg10[%c1_25, %c0_26, %c0_27], %32 {strides = array<i32>} : memref<2x8x128xf32, #tpu.memory_space<vmem>>, vector<1x8x128xf32>,
    %c1_i32 = arith.constant 1 : i32
    %c0_28 = arith.constant 0 : index
    %c0_29 = arith.constant 0 : index
    %c0_30 = arith.constant 0 : index
    %33 = vector.load %arg10[%c0_28, %c0_29, %c0_30] : memref<2x8x128xf32, #tpu.memory_space<vmem>>, vector<1x8x128xf32>
    %34 = vector.shape_cast %33 : vector<1x8x128xf32> to vector<8x128xf32>
    %35 = arith.index_cast %c1_i32 : i32 to index
    %c0_31 = arith.constant 0 : index
    %c0_32 = arith.constant 0 : index
    %36 = vector.load %arg1[%35, %c0_31, %c0_32] : memref<4x8x128xf32, #tpu.memory_space<vmem>>, vector<1x8x128xf32>
    %37 = vector.shape_cast %36 : vector<1x8x128xf32> to vector<8x128xf32>
    %c0_33 = arith.constant 0 : index
    %c0_34 = arith.constant 0 : index
    %c0_35 = arith.constant 0 : index
    %38 = vector.load %arg2[%c0_33, %c0_34, %c0_35] : memref<2x128x128xf32, #tpu.memory_space<vmem>>, vector<1x128x128xf32>
    %39 = vector.shape_cast %38 : vector<1x128x128xf32> to vector<128x128xf32>
    %cst_36 = arith.constant dense<0.000000e+00> : vector<8x128xf32>
    %40 = tpu.matmul %34, %39, %cst_36 {dimension_numbers = #tpu.dot_dimension_numbers<[1], [0], [0], [1], [0, 0, 1, 1], [], []>} : vector<8x128xf32>, vector<128x128xf32>, vector<8x128xf32> -> vector<8x128xf32>
    %41 = arith.addf %37, %40 : vector<8x128xf32>
    %42 = math.tanh %41 : vector<8x128xf32>
    %c0_37 = arith.constant 0 : index
    %c0_38 = arith.constant 0 : index
    %c0_39 = arith.constant 0 : index
    %43 = vector.load %arg10[%c0_37, %c0_38, %c0_39] : memref<2x8x128xf32, #tpu.memory_space<vmem>>, vector<1x8x128xf32>
    %44 = vector.shape_cast %43 : vector<1x8x128xf32> to vector<8x128xf32>
    %45 = vector.shape_cast %42 : vector<8x128xf32> to vector<1x8x128xf32>
    tpu.vector_store %arg10[%c0_37, %c0_38, %c0_39], %45 {strides = array<i32>} : memref<2x8x128xf32, #tpu.memory_space<vmem>>, vector<1x8x128xf32>,
    %c1_40 = arith.constant 1 : index
    %c0_41 = arith.constant 0 : index
    %c0_42 = arith.constant 0 : index
    %46 = vector.load %arg10[%c1_40, %c0_41, %c0_42] : memref<2x8x128xf32, #tpu.memory_space<vmem>>, vector<1x8x128xf32>
    %47 = vector.shape_cast %46 : vector<1x8x128xf32> to vector<8x128xf32>
    %c0_43 = arith.constant 0 : index
    %c0_44 = arith.constant 0 : index
    %c0_45 = arith.constant 0 : index
    %48 = vector.load %arg3[%c0_43, %c0_44, %c0_45] : memref<1x128x128xf32, #tpu.memory_space<vmem>>, vector<1x128x128xf32>
    %49 = vector.shape_cast %48 : vector<1x128x128xf32> to vector<128x128xf32>
    %cst_46 = arith.constant dense<0.000000e+00> : vector<8x128xf32>
    %50 = tpu.matmul %42, %49, %cst_46 {dimension_numbers = #tpu.dot_dimension_numbers<[1], [0], [0], [1], [0, 0, 1, 1], [], []>} : vector<8x128xf32>, vector<128x128xf32>, vector<8x128xf32> -> vector<8x128xf32>
    %c1_47 = arith.constant 1 : index
    %c0_48 = arith.constant 0 : index
    %c0_49 = arith.constant 0 : index
    %51 = vector.load %arg2[%c1_47, %c0_48, %c0_49] : memref<2x128x128xf32, #tpu.memory_space<vmem>>, vector<1x128x128xf32>
    %52 = vector.shape_cast %51 : vector<1x128x128xf32> to vector<128x128xf32>
    %cst_50 = arith.constant dense<0.000000e+00> : vector<8x128xf32>
    %53 = tpu.matmul %47, %52, %cst_50 {dimension_numbers = #tpu.dot_dimension_numbers<[1], [0], [0], [1], [0, 0, 1, 1], [], []>} : vector<8x128xf32>, vector<128x128xf32>, vector<8x128xf32> -> vector<8x128xf32>
    %54 = arith.addf %50, %53 : vector<8x128xf32>
    %c0_51 = arith.constant 0 : index
    %c0_52 = arith.constant 0 : index
    %c0_53 = arith.constant 0 : index
    %55 = vector.load %arg4[%c0_51, %c0_52, %c0_53] : memref<1x1x128xf32, #tpu.memory_space<vmem>>, vector<1x1x128xf32>
    %56 = vector.shape_cast %55 : vector<1x1x128xf32> to vector<1x128xf32>
    %57 = vector.broadcast %56 : vector<1x128xf32> to vector<8x128xf32>
    %58 = arith.addf %54, %57 : vector<8x128xf32>
    %59 = math.tanh %58 : vector<8x128xf32>
    %c1_54 = arith.constant 1 : index
    %c0_55 = arith.constant 0 : index
    %c0_56 = arith.constant 0 : index
    %60 = vector.load %arg10[%c1_54, %c0_55, %c0_56] : memref<2x8x128xf32, #tpu.memory_space<vmem>>, vector<1x8x128xf32>
    %61 = vector.shape_cast %60 : vector<1x8x128xf32> to vector<8x128xf32>
    %62 = vector.shape_cast %59 : vector<8x128xf32> to vector<1x8x128xf32>
    tpu.vector_store %arg10[%c1_54, %c0_55, %c0_56], %62 {strides = array<i32>} : memref<2x8x128xf32, #tpu.memory_space<vmem>>, vector<1x8x128xf32>,
    %c2_i32 = arith.constant 2 : i32
    %c0_57 = arith.constant 0 : index
    %c0_58 = arith.constant 0 : index
    %c0_59 = arith.constant 0 : index
    %63 = vector.load %arg10[%c0_57, %c0_58, %c0_59] : memref<2x8x128xf32, #tpu.memory_space<vmem>>, vector<1x8x128xf32>
    %64 = vector.shape_cast %63 : vector<1x8x128xf32> to vector<8x128xf32>
    %65 = arith.index_cast %c2_i32 : i32 to index
    %c0_60 = arith.constant 0 : index
    %c0_61 = arith.constant 0 : index
    %66 = vector.load %arg1[%65, %c0_60, %c0_61] : memref<4x8x128xf32, #tpu.memory_space<vmem>>, vector<1x8x128xf32>
    %67 = vector.shape_cast %66 : vector<1x8x128xf32> to vector<8x128xf32>
    %c0_62 = arith.constant 0 : index
    %c0_63 = arith.constant 0 : index
    %c0_64 = arith.constant 0 : index
    %68 = vector.load %arg2[%c0_62, %c0_63, %c0_64] : memref<2x128x128xf32, #tpu.memory_space<vmem>>, vector<1x128x128xf32>
    %69 = vector.shape_cast %68 : vector<1x128x128xf32> to vector<128x128xf32>
    %cst_65 = arith.constant dense<0.000000e+00> : vector<8x128xf32>
    %70 = tpu.matmul %64, %69, %cst_65 {dimension_numbers = #tpu.dot_dimension_numbers<[1], [0], [0], [1], [0, 0, 1, 1], [], []>} : vector<8x128xf32>, vector<128x128xf32>, vector<8x128xf32> -> vector<8x128xf32>
    %71 = arith.addf %67, %70 : vector<8x128xf32>
    %72 = math.tanh %71 : vector<8x128xf32>
    %c0_66 = arith.constant 0 : index
    %c0_67 = arith.constant 0 : index
    %c0_68 = arith.constant 0 : index
    %73 = vector.load %arg10[%c0_66, %c0_67, %c0_68] : memref<2x8x128xf32, #tpu.memory_space<vmem>>, vector<1x8x128xf32>
    %74 = vector.shape_cast %73 : vector<1x8x128xf32> to vector<8x128xf32>
    %75 = vector.shape_cast %72 : vector<8x128xf32> to vector<1x8x128xf32>
    tpu.vector_store %arg10[%c0_66, %c0_67, %c0_68], %75 {strides = array<i32>} : memref<2x8x128xf32, #tpu.memory_space<vmem>>, vector<1x8x128xf32>,
    %c1_69 = arith.constant 1 : index
    %c0_70 = arith.constant 0 : index
    %c0_71 = arith.constant 0 : index
    %76 = vector.load %arg10[%c1_69, %c0_70, %c0_71] : memref<2x8x128xf32, #tpu.memory_space<vmem>>, vector<1x8x128xf32>
    %77 = vector.shape_cast %76 : vector<1x8x128xf32> to vector<8x128xf32>
    %c0_72 = arith.constant 0 : index
    %c0_73 = arith.constant 0 : index
    %c0_74 = arith.constant 0 : index
    %78 = vector.load %arg3[%c0_72, %c0_73, %c0_74] : memref<1x128x128xf32, #tpu.memory_space<vmem>>, vector<1x128x128xf32>
    %79 = vector.shape_cast %78 : vector<1x128x128xf32> to vector<128x128xf32>
    %cst_75 = arith.constant dense<0.000000e+00> : vector<8x128xf32>
    %80 = tpu.matmul %72, %79, %cst_75 {dimension_numbers = #tpu.dot_dimension_numbers<[1], [0], [0], [1], [0, 0, 1, 1], [], []>} : vector<8x128xf32>, vector<128x128xf32>, vector<8x128xf32> -> vector<8x128xf32>
    %c1_76 = arith.constant 1 : index
    %c0_77 = arith.constant 0 : index
    %c0_78 = arith.constant 0 : index
    %81 = vector.load %arg2[%c1_76, %c0_77, %c0_78] : memref<2x128x128xf32, #tpu.memory_space<vmem>>, vector<1x128x128xf32>
    %82 = vector.shape_cast %81 : vector<1x128x128xf32> to vector<128x128xf32>
    %cst_79 = arith.constant dense<0.000000e+00> : vector<8x128xf32>
    %83 = tpu.matmul %77, %82, %cst_79 {dimension_numbers = #tpu.dot_dimension_numbers<[1], [0], [0], [1], [0, 0, 1, 1], [], []>} : vector<8x128xf32>, vector<128x128xf32>, vector<8x128xf32> -> vector<8x128xf32>
    %84 = arith.addf %80, %83 : vector<8x128xf32>
    %c0_80 = arith.constant 0 : index
    %c0_81 = arith.constant 0 : index
    %c0_82 = arith.constant 0 : index
    %85 = vector.load %arg4[%c0_80, %c0_81, %c0_82] : memref<1x1x128xf32, #tpu.memory_space<vmem>>, vector<1x1x128xf32>
    %86 = vector.shape_cast %85 : vector<1x1x128xf32> to vector<1x128xf32>
    %87 = vector.broadcast %86 : vector<1x128xf32> to vector<8x128xf32>
    %88 = arith.addf %84, %87 : vector<8x128xf32>
    %89 = math.tanh %88 : vector<8x128xf32>
    %c1_83 = arith.constant 1 : index
    %c0_84 = arith.constant 0 : index
    %c0_85 = arith.constant 0 : index
    %90 = vector.load %arg10[%c1_83, %c0_84, %c0_85] : memref<2x8x128xf32, #tpu.memory_space<vmem>>, vector<1x8x128xf32>
    %91 = vector.shape_cast %90 : vector<1x8x128xf32> to vector<8x128xf32>
    %92 = vector.shape_cast %89 : vector<8x128xf32> to vector<1x8x128xf32>
    tpu.vector_store %arg10[%c1_83, %c0_84, %c0_85], %92 {strides = array<i32>} : memref<2x8x128xf32, #tpu.memory_space<vmem>>, vector<1x8x128xf32>,
    %c3_i32 = arith.constant 3 : i32
    %c0_86 = arith.constant 0 : index
    %c0_87 = arith.constant 0 : index
    %c0_88 = arith.constant 0 : index
    %93 = vector.load %arg10[%c0_86, %c0_87, %c0_88] : memref<2x8x128xf32, #tpu.memory_space<vmem>>, vector<1x8x128xf32>
    %94 = vector.shape_cast %93 : vector<1x8x128xf32> to vector<8x128xf32>
    %95 = arith.index_cast %c3_i32 : i32 to index
    %c0_89 = arith.constant 0 : index
    %c0_90 = arith.constant 0 : index
    %96 = vector.load %arg1[%95, %c0_89, %c0_90] : memref<4x8x128xf32, #tpu.memory_space<vmem>>, vector<1x8x128xf32>
    %97 = vector.shape_cast %96 : vector<1x8x128xf32> to vector<8x128xf32>
    %c0_91 = arith.constant 0 : index
    %c0_92 = arith.constant 0 : index
    %c0_93 = arith.constant 0 : index
    %98 = vector.load %arg2[%c0_91, %c0_92, %c0_93] : memref<2x128x128xf32, #tpu.memory_space<vmem>>, vector<1x128x128xf32>
    %99 = vector.shape_cast %98 : vector<1x128x128xf32> to vector<128x128xf32>
    %cst_94 = arith.constant dense<0.000000e+00> : vector<8x128xf32>
    %100 = tpu.matmul %94, %99, %cst_94 {dimension_numbers = #tpu.dot_dimension_numbers<[1], [0], [0], [1], [0, 0, 1, 1], [], []>} : vector<8x128xf32>, vector<128x128xf32>, vector<8x128xf32> -> vector<8x128xf32>
    %101 = arith.addf %97, %100 : vector<8x128xf32>
    %102 = math.tanh %101 : vector<8x128xf32>
    %c0_95 = arith.constant 0 : index
    %c0_96 = arith.constant 0 : index
    %c0_97 = arith.constant 0 : index
    %103 = vector.load %arg10[%c0_95, %c0_96, %c0_97] : memref<2x8x128xf32, #tpu.memory_space<vmem>>, vector<1x8x128xf32>
    %104 = vector.shape_cast %103 : vector<1x8x128xf32> to vector<8x128xf32>
    %105 = vector.shape_cast %102 : vector<8x128xf32> to vector<1x8x128xf32>
    tpu.vector_store %arg10[%c0_95, %c0_96, %c0_97], %105 {strides = array<i32>} : memref<2x8x128xf32, #tpu.memory_space<vmem>>, vector<1x8x128xf32>,
    %c1_98 = arith.constant 1 : index
    %c0_99 = arith.constant 0 : index
    %c0_100 = arith.constant 0 : index
    %106 = vector.load %arg10[%c1_98, %c0_99, %c0_100] : memref<2x8x128xf32, #tpu.memory_space<vmem>>, vector<1x8x128xf32>
    %107 = vector.shape_cast %106 : vector<1x8x128xf32> to vector<8x128xf32>
    %c0_101 = arith.constant 0 : index
    %c0_102 = arith.constant 0 : index
    %c0_103 = arith.constant 0 : index
    %108 = vector.load %arg3[%c0_101, %c0_102, %c0_103] : memref<1x128x128xf32, #tpu.memory_space<vmem>>, vector<1x128x128xf32>
    %109 = vector.shape_cast %108 : vector<1x128x128xf32> to vector<128x128xf32>
    %cst_104 = arith.constant dense<0.000000e+00> : vector<8x128xf32>
    %110 = tpu.matmul %102, %109, %cst_104 {dimension_numbers = #tpu.dot_dimension_numbers<[1], [0], [0], [1], [0, 0, 1, 1], [], []>} : vector<8x128xf32>, vector<128x128xf32>, vector<8x128xf32> -> vector<8x128xf32>
    %c1_105 = arith.constant 1 : index
    %c0_106 = arith.constant 0 : index
    %c0_107 = arith.constant 0 : index
    %111 = vector.load %arg2[%c1_105, %c0_106, %c0_107] : memref<2x128x128xf32, #tpu.memory_space<vmem>>, vector<1x128x128xf32>
    %112 = vector.shape_cast %111 : vector<1x128x128xf32> to vector<128x128xf32>
    %cst_108 = arith.constant dense<0.000000e+00> : vector<8x128xf32>
    %113 = tpu.matmul %107, %112, %cst_108 {dimension_numbers = #tpu.dot_dimension_numbers<[1], [0], [0], [1], [0, 0, 1, 1], [], []>} : vector<8x128xf32>, vector<128x128xf32>, vector<8x128xf32> -> vector<8x128xf32>
    %114 = arith.addf %110, %113 : vector<8x128xf32>
    %c0_109 = arith.constant 0 : index
    %c0_110 = arith.constant 0 : index
    %c0_111 = arith.constant 0 : index
    %115 = vector.load %arg4[%c0_109, %c0_110, %c0_111] : memref<1x1x128xf32, #tpu.memory_space<vmem>>, vector<1x1x128xf32>
    %116 = vector.shape_cast %115 : vector<1x1x128xf32> to vector<1x128xf32>
    %117 = vector.broadcast %116 : vector<1x128xf32> to vector<8x128xf32>
    %118 = arith.addf %114, %117 : vector<8x128xf32>
    %119 = math.tanh %118 : vector<8x128xf32>
    %c1_112 = arith.constant 1 : index
    %c0_113 = arith.constant 0 : index
    %c0_114 = arith.constant 0 : index
    %120 = vector.load %arg10[%c1_112, %c0_113, %c0_114] : memref<2x8x128xf32, #tpu.memory_space<vmem>>, vector<1x8x128xf32>
    %121 = vector.shape_cast %120 : vector<1x8x128xf32> to vector<8x128xf32>
    %122 = vector.shape_cast %119 : vector<8x128xf32> to vector<1x8x128xf32>
    tpu.vector_store %arg10[%c1_112, %c0_113, %c0_114], %122 {strides = array<i32>} : memref<2x8x128xf32, #tpu.memory_space<vmem>>, vector<1x8x128xf32>,
    %c4_i32 = arith.constant 4 : i32
    %c1_i32_115 = arith.constant 1 : i32
    %123 = arith.cmpi eq, %arg0, %c1_i32_115 : i32
    %124 = arith.extui %123 : i1 to i32
    %c0_i32_116 = arith.constant 0 : i32
    %125 = arith.cmpi ne, %124, %c0_i32_116 : i32
    scf.if %125 {
      %c1_117 = arith.constant 1 : index
      %c0_118 = arith.constant 0 : index
      %c0_119 = arith.constant 0 : index
      %126 = vector.load %arg10[%c1_117, %c0_118, %c0_119] : memref<2x8x128xf32, #tpu.memory_space<vmem>>, vector<1x8x128xf32>
      %127 = vector.shape_cast %126 : vector<1x8x128xf32> to vector<8x128xf32>
      %128 = tpu.iota {dimensions = array<i32: 0>} : vector<8x128xi32>
      %c4_i32_120 = arith.constant 4 : i32
      %129 = vector.broadcast %c4_i32_120 : i32 to vector<8x128xi32>
      %130 = arith.cmpi slt, %128, %129 : vector<8x128xi32>
      %131 = arith.extui %130 : vector<8x128xi1> to vector<8x128xi32>
      %132 = arith.sitofp %131 : vector<8x128xi32> to vector<8x128xf32>
      %133 = arith.mulf %127, %132 : vector<8x128xf32>
      %cst_121 = arith.constant dense<0.000000e+00> : vector<128xf32>
      %134 = vector.multi_reduction <add>, %133, %cst_121 [0] : vector<8x128xf32> to vector<128xf32>
      %135 = vector.shape_cast %134 : vector<128xf32> to vector<1x128xf32>
      %cst_122 = arith.constant 2.500000e-01 : f32
      %136 = vector.broadcast %cst_122 : f32 to vector<1x128xf32>
      %137 = arith.mulf %135, %136 : vector<1x128xf32>
      %138 = vector.broadcast %137 : vector<1x128xf32> to vector<8x128xf32>
      %139 = arith.subf %127, %138 : vector<8x128xf32>
      %140 = arith.mulf %139, %132 : vector<8x128xf32>
      %141 = arith.mulf %140, %140 : vector<8x128xf32>
      %cst_123 = arith.constant dense<0.000000e+00> : vector<128xf32>
      %142 = vector.multi_reduction <add>, %141, %cst_123 [0] : vector<8x128xf32> to vector<128xf32>
      %143 = vector.shape_cast %142 : vector<128xf32> to vector<1x128xf32>
      %cst_124 = arith.constant 2.500000e-01 : f32
      %144 = vector.broadcast %cst_124 : f32 to vector<1x128xf32>
      %145 = arith.mulf %143, %144 : vector<1x128xf32>
      %146 = vector.broadcast %137 : vector<1x128xf32> to vector<8x128xf32>
      %147 = arith.subf %127, %146 : vector<8x128xf32>
      %cst_125 = arith.constant 9.99999974E-6 : f32
      %148 = vector.broadcast %cst_125 : f32 to vector<1x128xf32>
      %149 = arith.addf %145, %148 : vector<1x128xf32>
      %150 = math.rsqrt %149 : vector<1x128xf32>
      %151 = vector.broadcast %150 : vector<1x128xf32> to vector<8x128xf32>
      %152 = arith.mulf %147, %151 : vector<8x128xf32>
      %c0_126 = arith.constant 0 : index
      %c0_127 = arith.constant 0 : index
      %153 = vector.load %arg5[%c0_126, %c0_127] : memref<1x128xf32, #tpu.memory_space<vmem>>, vector<1x128xf32>
      %154 = vector.broadcast %153 : vector<1x128xf32> to vector<8x128xf32>
      %155 = arith.mulf %152, %154 : vector<8x128xf32>
      %c0_128 = arith.constant 0 : index
      %c0_129 = arith.constant 0 : index
      %156 = vector.load %arg6[%c0_128, %c0_129] : memref<1x128xf32, #tpu.memory_space<vmem>>, vector<1x128xf32>
      %157 = vector.broadcast %156 : vector<1x128xf32> to vector<8x128xf32>
      %158 = arith.addf %155, %157 : vector<8x128xf32>
      %c0_130 = arith.constant 0 : index
      %c0_131 = arith.constant 0 : index
      %159 = vector.load %arg7[%c0_130, %c0_131] : memref<1x128xf32, #tpu.memory_space<vmem>>, vector<1x128xf32>
      %160 = vector.broadcast %159 : vector<1x128xf32> to vector<8x128xf32>
      %161 = arith.mulf %158, %160 : vector<8x128xf32>
      %cst_132 = arith.constant dense<0.000000e+00> : vector<8xf32>
      %162 = vector.multi_reduction <add>, %161, %cst_132 [1] : vector<8x128xf32> to vector<8xf32>
      %163 = vector.shape_cast %162 : vector<8xf32> to vector<8x1xf32>
      %c0_133 = arith.constant 0 : index
      %c0_134 = arith.constant 0 : index
      %164 = memref.load %arg8[%c0_133, %c0_134] : memref<1x1xf32, #tpu.memory_space<smem>>
      %165 = vector.broadcast %164 : f32 to vector<8x1xf32>
      %166 = arith.addf %163, %165 : vector<8x1xf32>
      %167 = vector.shape_cast %166 : vector<8x1xf32> to vector<8x1xf32>
      %168 = vector.broadcast %167 : vector<8x1xf32> to vector<8x128xf32>
      %c0_135 = arith.constant 0 : index
      %c0_136 = arith.constant 0 : index
      %169 = vector.load %arg9[%c0_135, %c0_136] : memref<8x128xf32, #tpu.memory_space<vmem>>, vector<8x128xf32>
      tpu.vector_store %arg9[%c0_135, %c0_136], %168 {strides = array<i32>} : memref<8x128xf32, #tpu.memory_space<vmem>>, vector<8x128xf32>,
    } else {
    }
    return
  }
  func.func @transform_0(%arg0: i32) -> (i32, i32, i32) {
    %c0_i32 = arith.constant 0 : i32
    %c0_i32_0 = arith.constant 0 : i32
    %c0_i32_1 = arith.constant 0 : i32
    return %arg0, %c0_i32, %c0_i32_0 : i32, i32, i32
  }
  func.func @transform_1(%arg0: i32) -> (i32, i32, i32) {
    %c0_i32 = arith.constant 0 : i32
    %c0_i32_0 = arith.constant 0 : i32
    %c0_i32_1 = arith.constant 0 : i32
    %c0_i32_2 = arith.constant 0 : i32
    return %c0_i32, %c0_i32_0, %c0_i32_1 : i32, i32, i32
  }
  func.func @transform_2(%arg0: i32) -> (i32, i32, i32) {
    %c0_i32 = arith.constant 0 : i32
    %c0_i32_0 = arith.constant 0 : i32
    %c0_i32_1 = arith.constant 0 : i32
    %c0_i32_2 = arith.constant 0 : i32
    return %c0_i32, %c0_i32_0, %c0_i32_1 : i32, i32, i32
  }
  func.func @transform_3(%arg0: i32) -> (i32, i32, i32) {
    %c0_i32 = arith.constant 0 : i32
    %c0_i32_0 = arith.constant 0 : i32
    %c0_i32_1 = arith.constant 0 : i32
    %c0_i32_2 = arith.constant 0 : i32
    return %c0_i32, %c0_i32_0, %c0_i32_1 : i32, i32, i32
  }
  func.func @transform_4(%arg0: i32) -> (i32, i32) {
    %c0_i32 = arith.constant 0 : i32
    %c0_i32_0 = arith.constant 0 : i32
    %c0_i32_1 = arith.constant 0 : i32
    return %c0_i32, %c0_i32_0 : i32, i32
  }
  func.func @transform_5(%arg0: i32) -> (i32, i32) {
    %c0_i32 = arith.constant 0 : i32
    %c0_i32_0 = arith.constant 0 : i32
    %c0_i32_1 = arith.constant 0 : i32
    return %c0_i32, %c0_i32_0 : i32, i32
  }
  func.func @transform_6(%arg0: i32) -> (i32, i32) {
    %c0_i32 = arith.constant 0 : i32
    %c0_i32_0 = arith.constant 0 : i32
    %c0_i32_1 = arith.constant 0 : i32
    return %c0_i32, %c0_i32_0 : i32, i32
  }
  func.func @transform_7(%arg0: i32) -> (i32, i32) {
    %c0_i32 = arith.constant 0 : i32
    %c0_i32_0 = arith.constant 0 : i32
    %c0_i32_1 = arith.constant 0 : i32
    return %c0_i32, %c0_i32_0 : i32, i32
  }
  func.func @transform_8(%arg0: i32) -> (i32, i32) {
    %c0_i32 = arith.constant 0 : i32
    %c0_i32_0 = arith.constant 0 : i32
    %c0_i32_1 = arith.constant 0 : i32
    return %c0_i32, %c0_i32_0 : i32, i32
  }
}

</mosaic_0001>

<bundles_post_ra>
// kernel: vanilla_rnn_forward.2
= control target key start
LH: loop header
LB: loop body
LE: loop exit
PB: predicated region body
PF: predicated region fallthrough
CT: control target
= control target key end

     0   :  { %s419_s12 = smov 0   ;;  %s445_s0 = inlined_call_operand.vmem [shape: f32[64,16], index: 0, kind: input, shape index: {}]   ;;  %s446_s1 = inlined_call_operand.vmem [shape: f32[16,128], index: 1, kind: input, shape index: {}]   ;;  %s447_s2 = inlined_call_operand.vmem [shape: f32[1,128], index: 2, kind: input, shape index: {}]   ;;  %s448_s3 = inlined_call_operand.vmem [shape: f32[64,128], index: 3, kind: output, shape index: {}]  }
   0x1 LB: > { %s345_s13 = sadd.s32 4294967295, %s397_s12   ;;  %p349_p0 = scmp.ge.s32.totalorder %s397_s12, 1  ;;  %s397_s12 = sphi %s419_s12, %s13_s12  }
   0x2   : > { %p138_p1 = scmp.lt.s32.totalorder %s397_s12, 3 }
   0x4   : > { %p139_p2 = pnand %p349_p0, %p138_p1 }
   0x5   : > { %v178_v0 = vld [vmem:[%s446_s1] sm:$0xff] (!%p139_p2)  ;;  %v179_v1 = vld [vmem:[%s446_s1 + $0x8] sm:$0xff] (!%p139_p2)  ;;  %s350_s18 = sshll.u32 (!%p139_p2), %s345_s13, 2  ;;  %vm187_vm0 = vcmask (!%p139_p2), 130048  }
   0x6   : > { %142 = sbr.rel (%p139_p2) target bundleno = 234 (0xea), region = 32  ;;  %v377_v2 = vpack.c.bf16 (!%p139_p2), %v179_v1, %v178_v0  ;;  %p163_p3 = scmp.lt.s32.totalorder (!%p139_p2), %s350_s18, 7  ;;  %v354_v7 = vld [vmem:[%s447_s2] ss:$0 sm:$0xff] (!%p139_p2) }
   0x8   : > { %378 = vmatprep.subr.bf16.mxu0 (!%p139_p2), %v377_v2  ;;  %381 = vmatprep.subr.bf16.mxu1 (!%p139_p2), %v377_v2 }
   0x9   : > { %380 = vmatpush3.bf16.msra.mxu0 (!%p139_p2), %v377_v2  ;;  %382 = vmatpush3.bf16.msra.mxu1 (!%p139_p2), %v377_v2 }
   0xd   : > { %s450_s18 = smov (!%p163_p3, %s350_s18), 7 }
   0xe   : > { %s351_s19 = sshll.u32 %s450_s18, 3 }
   0xf   : > { %s166_s22 = scalar_lea.vmem %s445_s0, %s351_s19  ;;  %s172_s27 = scalar_lea.vmem %s448_s3, %s351_s19 }
  0x10   : > { %v174_v3 = vld [vmem:[%s166_s22] sm:$0xff]  ;;  %v175_v4 = vld [vmem:[%s166_s22 + $0x8] sm:$0xff]  ;;  %v176_v5 = vld [vmem:[%s166_s22 + $0x10] sm:$0xff] }
  0x11   : > { %371 = vmatprep.mubr.msk.f32.mxu0 %vm187_vm0, %v174_v3  ;;  %374 = vmatprep.mubr.msk.f32.mxu1 %vm187_vm0, %v176_v5  ;;  %v177_v6 = vld [vmem:[%s166_s22 + $0x18] sm:$0xff] }
  0x12   : > { %372 = vmatmul.mubr.msk.f32.vlgmr.msra.gmra.mrb[0].mxu0 %vm187_vm0, %v175_v4  ;;  %375 = vmatmul.mubr.msk.f32.vlgmr.msra.gmra.mrb[0].mxu1 %vm187_vm0, %v177_v6 }
  0xe5   : > { %v373_v8 = vpop.f32.mrb[0].mxu0  ;;  %v376_v9 = vpop.f32.mrb[0].mxu1 }
  0xe6   : > { %v266_v10 = vpop.f32.mrb[1].mxu0  ;;  %v276_v11 = vpop.f32.mrb[1].mxu1  ;;  %v272_v14 = vadd.f32 %v373_v8, %v354_v7  ;;  %v282_v15 = vadd.f32 %v376_v9, %v354_v7 }
  0xe7   : > { %v267_v12 = vadd.f32 %v354_v7, %v266_v10  ;;  %v277_v13 = vadd.f32 %v354_v7, %v276_v11 }
  0xe8   : > { %286 = vst [vmem:[%s172_s27 + $0x8] sm:$0xff] %v272_v14  ;;  %288 = vst [vmem:[%s172_s27 + $0x18] sm:$0xff] %v282_v15 }
  0xe9   : > { %285 = vst [vmem:[%s172_s27] sm:$0xff] %v267_v12  ;;  %287 = vst [vmem:[%s172_s27 + $0x10] sm:$0xff] %v277_v13 }
  0xea PF: > { %s13_s12 = sadd.s32 1, %s397_s12  }
  0xeb   : > { %p10_p4 = scmp.ge.s32.totalorder %s13_s12, 4  }
  0xed   :  { %12 = sbr.rel (!%p10_p4) target bundleno = 1 (0x1), region = 62 }

// kernel: vanilla_rnn_forward.3
= control target key start
LH: loop header
LB: loop body
LE: loop exit
PB: predicated region body
PF: predicated region fallthrough
CT: control target
= control target key end

     0   :  { %s3099_s0 = inlined_call_operand.vmem [shape: f32[8,8,128], index: 0, kind: input, shape index: {}]   ;;  %s3100_s1 = inlined_call_operand.vmem [shape: f32[2,128,128], index: 1, kind: input, shape index: {}]   ;;  %s3101_s2 = inlined_call_operand.hbm [shape: f32[1,128,128], index: 2, kind: input, shape index: {}]   ;;  %s3102_s3 = inlined_call_operand.vmem [shape: f32[1,1,128], index: 3, kind: input, shape index: {}]   ;;  %s3103_s4 = inlined_call_operand.vmem [shape: f32[1,128], index: 4, kind: input, shape index: {}]   ;;  %s3104_s5 = inlined_call_operand.vmem [shape: f32[1,128], index: 5, kind: input, shape index: {}]   ;;  %s3105_s6 = inlined_call_operand.vmem [shape: f32[1,128], index: 6, kind: input, shape index: {}]   ;;  %s3106_s7 = inlined_call_operand.<no memory space> [shape: f32[1,1], index: 7, kind: input, shape index: {}]   ;;  %s3107_s8 = inlined_call_operand.vmem [shape: f32[8,128], index: 8, kind: output, shape index: {}]  }
   0x1   :  { %13 = sst [smem:[#allocation3]] %s3106_s7 }
   0x2   :  { %14 = vsyncpa [#allocation5], 0  ;;  %s2656_s29 = smov 0  }
   0x3 LB: > { %s2662_s30 = sadd.s32 4294967295, %s2598_s29   ;;  %p1518_p0 = scmp.ge.s32.totalorder %s2598_s29, 1  ;;  %s2598_s29 = sphi %s2656_s29, %s20_s29  }
   0x4   : > { %p219_p1 = scmp.lt.s32.totalorder %s2598_s29, 3  ;;  %s2600_s7 = smov [#allocation4]  }
   0x5   : > { %s234_s9 = sshll.u32 %s2600_s7, 4  ;;  %p3108_p4 = scmp.eq.s32.totalorder %s2662_s30, 0  ;;  %s235_s9 = int_to_ptr.vmem [resolvable:$true] %s234_s9 }
   0x6   : > { %p2667_p3 = pnand %p1518_p0, %p219_p1  ;;  %s2560_s14 = scalar_lea.hbm %s3101_s2, 2048 }
   0x7   : > { %p2561_p7 = scmp.ne.s32.totalorder %s3101_s2, %s2560_s14  ;;  %p2567_p11 = scmp.lt.u32.totalorder %s2560_s14, %s3101_s2 }
   0x8   : > { %s3110_s10 = scalar_select %p2667_p3, 1, 0 }
   0x9   : > { %p2520_p5 = pneg %p2667_p3 }
   0xb   : > { %p2676_p6 = pnand %p3108_p4, %p2520_p5 }
   0xd   : > { %p2562_p8 = pneg %p2676_p6 }
   0xf   : > { %p2563_p9 = pnand %p2562_p8, %p2561_p7 }
  0x11   : > { %p2564_p10 = pneg %p2563_p9 }
  0x13   : > { %p2569_p12 = pnand %p2567_p11, %p2564_p10 }
  0x15   : > { %2572 = shalt.err (!%p2569_p12)
}
  0x16   : > { %s2573_s19 = scalar_lea.vmem %s235_s9, 2048  ;;  %p2581_p5 = scmp.lt.s32.totalorder %s235_s9, %s235_s9 }
  0x17   : > { %p2574_p13 = scmp.ne.s32.totalorder %s235_s9, %s2573_s19  ;;  %p2582_p2 = scmp.lt.s32.totalorder %s2573_s19, %s2573_s19 }
  0x19   : > { %p2576_p0 = pnand %p2574_p13, %p2562_p8  ;;  %p2583_p4 = por %p2582_p2, %p2581_p5 }
  0x1b   : > { %p2577_p1 = pneg %p2576_p0 }
  0x1d   : > { %p2584_p3 = pnand %p2583_p4, %p2577_p1 }
  0x1f   : > { %2587 = shalt.err (!%p2584_p3)
}
  0x20   : > { %s2601_s20 = smov 128   ;;  %s2602_s21 = smov 8  }
  0x21   : > { %2523 = dma.hbm_to_vmem [thread:$0]  (!%p2676_p6), %s3101_s2, 2048, %s235_s9, [#allocation5], %s2601_s20, %s2601_s20, %s2602_s21  }
  0x22   : > { %p3112_p7 = scmp.ne.s32.totalorder %s3110_s10, 0 }
  0x23   : > { %p3113_p9 = scmp.eq.s32.totalorder (!%p3112_p7), %s2662_s30, 0 }
  0x24   : > { %274 = sbr.rel (%p3112_p7) target bundleno = 1461 (0x5b5), region = 52 }
  0x2b   : > { %2593 = dma.done.wait (%p3113_p9), [#allocation5], 2048   ;;  %p3114_p8 = pmov %p3113_p9 }
  0x2c   : > { %s1523_s24 = sshll.u32 %s2662_s30, 2  ;;  %p3115_p3 = scmp.ne.s32.totalorder %s2662_s30, 0 }
  0x2d   : > { %2595 = vsyncadd (%p3114_p8), [#allocation5], 4294965248  ;;  %p304_p2 = scmp.lt.s32.totalorder %s1523_s24, 7  ;;  %v2603_v0 = vmov (!%p3115_p3), 0.0  }
  0x2e   : > { %312 = sbr.rel (%p3115_p3) target bundleno = 53 (0x35), region = 60  ;;  %313 = vst [vmem:[#allocation2] sm:$0xff] (!%p3115_p3), %v2603_v0  ;;  %314 = vst [vmem:[#allocation2 + $0x8] sm:$0xff] (!%p3115_p3), %v2603_v0 }
  0x2f   : > { %s3117_s24 = smov (!%p304_p2, %s1523_s24), 7 }
  0x30   : > { %s1524_s25 = sshll.u32 %s3117_s24, 3 }
  0x31   : > { %s2706_s28 = scalar_lea.vmem %s3099_s0, %s1524_s25 }
  0x35 PF: > { %v317_v1 = vld [vmem:[%s3100_s1] sm:$0xff]  ;;  %v318_v2 = vld [vmem:[%s3100_s1 + $0x8] sm:$0xff]  ;;  %v319_v3 = vld [vmem:[%s3100_s1 + $0x10] sm:$0xff]  ;;  %v2604_v4 = vmov 0.0|0.0   ;;  %vm2605_vm0 = vmmov 0   ;;  %v2606_v7 = vmov 0.0  }
  0x36   : > { %2228 = vmatprep.subr.bf16.mxu0 %v2604_v4  ;;  %v2720_v5 = vpack.c.bf16 %v318_v2, %v317_v1  ;;  %v320_v6 = vld [vmem:[%s3100_s1 + $0x18] sm:$0xff]  ;;  %1840 = vmatprep.mubr.msk.f32.mxu0 %vm2605_vm0, %v2606_v7  ;;  %v321_v9 = vld [vmem:[%s3100_s1 + $0x20] sm:$0xff]  ;;  %v322_v10 = vld [vmem:[%s3100_s1 + $0x28] sm:$0xff]  ;;  %p1597_p4 = scmp.ne.s32.totalorder %s2662_s30, 1 }
  0x37   : > { %2252 = vmatprep.subr.bf16.mxu1 %v2604_v4  ;;  %1875 = vmatprep.mubr.msk.f32.mxu1 %vm2605_vm0, %v2606_v7  ;;  %v2731_v8 = vpack.c.bf16 %v320_v6, %v319_v3  ;;  %v1526_v11 = vld [vmem:[%s3100_s1 + $0x80] sm:$0xff]  ;;  %v1527_v12 = vld [vmem:[%s3100_s1 + $0x88] sm:$0xff]  ;;  %v1528_v13 = vld [vmem:[%s3100_s1 + $0x90] sm:$0xff]  ;;  %v2753_v15 = vpack.c.bf16 %v322_v10, %v321_v9  ;;  %s1473_s18 = sld [smem:[#allocation3]] (!%p1597_p4) }
  0x38   : > { %2230 = vmatpush3.bf16.msra.mxu0 %v2720_v5  ;;  %v1529_v14 = vld [vmem:[%s3100_s1 + $0x98] sm:$0xff]  ;;  %v2755_v16 = vpack.c.bf16 %v1527_v12, %v1526_v11  ;;  %v323_v17 = vld [vmem:[%s3100_s1 + $0x30] sm:$0xff]  ;;  %v1530_v20 = vld [vmem:[%s3100_s1 + $0xa0] sm:$0xff] }
  0x39   : > { %2231 = vmatprep.subr.bf16.mxu0 %v2604_v4  ;;  %v324_v18 = vld [vmem:[%s3100_s1 + $0x38] sm:$0xff]  ;;  %v2765_v19 = vpack.c.bf16 %v1529_v14, %v1528_v13  ;;  %v1531_v21 = vld [vmem:[%s3100_s1 + $0xa8] sm:$0xff]  ;;  %v325_v23 = vld [vmem:[%s3100_s1 + $0x40] sm:$0xff] }
  0x3a   : > { %2254 = vmatpush3.bf16.msra.mxu1 %v2755_v16  ;;  %v2775_v22 = vpack.c.bf16 %v324_v18, %v323_v17  ;;  %v326_v24 = vld [vmem:[%s3100_s1 + $0x48] sm:$0xff]  ;;  %v2785_v25 = vpack.c.bf16 %v1531_v21, %v1530_v20  ;;  %v1532_v26 = vld [vmem:[%s3100_s1 + $0xb0] sm:$0xff]  ;;  %v1533_v27 = vld [vmem:[%s3100_s1 + $0xb8] sm:$0xff] }
  0x3b   : > { %2255 = vmatprep.subr.bf16.mxu1 %v2604_v4  ;;  %v2795_v28 = vpack.c.bf16 %v326_v24, %v325_v23  ;;  %v327_v29 = vld [vmem:[%s3100_s1 + $0x50] sm:$0xff]  ;;  %v328_v30 = vld [vmem:[%s3100_s1 + $0x58] sm:$0xff]  ;;  %v2805_v31 = vpack.c.bf16 %v1533_v27, %v1532_v26  ;;  %v1534_v32 = vld [vmem:[%s3100_s1 + $0xc0] sm:$0xff] }
  0x3c   : > { %2233 = vmatpush3.bf16.msra.mxu0 %v2731_v8  ;;  %v1535_v33 = vld [vmem:[%s3100_s1 + $0xc8] sm:$0xff]  ;;  %v2815_v34 = vpack.c.bf16 %v328_v30, %v327_v29  ;;  %v329_v35 = vld [vmem:[%s3100_s1 + $0x60] sm:$0xff]  ;;  %v1536_v38 = vld [vmem:[%s3100_s1 + $0xd0] sm:$0xff] }
  0x3d   : > { %2234 = vmatprep.subr.bf16.mxu0 %v2604_v4  ;;  %v330_v36 = vld [vmem:[%s3100_s1 + $0x68] sm:$0xff]  ;;  %v2825_v37 = vpack.c.bf16 %v1535_v33, %v1534_v32  ;;  %v1537_v39 = vld [vmem:[%s3100_s1 + $0xd8] sm:$0xff]  ;;  %v331_v41 = vld [vmem:[%s3100_s1 + $0x70] sm:$0xff] }
  0x3e   : > { %2257 = vmatpush3.bf16.msra.mxu1 %v2765_v19  ;;  %v2835_v40 = vpack.c.bf16 %v330_v36, %v329_v35  ;;  %v332_v42 = vld [vmem:[%s3100_s1 + $0x78] sm:$0xff]  ;;  %v2845_v43 = vpack.c.bf16 %v1537_v39, %v1536_v38  ;;  %v1538_v44 = vld [vmem:[%s3100_s1 + $0xe0] sm:$0xff]  ;;  %v1539_v45 = vld [vmem:[%s3100_s1 + $0xe8] sm:$0xff] }
  0x3f   : > { %2258 = vmatprep.subr.bf16.mxu1 %v2604_v4  ;;  %v2855_v46 = vpack.c.bf16 %v332_v42, %v331_v41  ;;  %v408_v47 = vld [vmem:[#allocation4] sm:$0xff]  ;;  %v409_v48 = vld [vmem:[#allocation4 + $0x8] sm:$0xff]  ;;  %v2859_v49 = vpack.c.bf16 %v1539_v45, %v1538_v44  ;;  %v315_v52 = vld [vmem:[#allocation2] sm:$0xff] }
  0x40   : > { %2236 = vmatpush3.bf16.msra.mxu0 %v2753_v15  ;;  %v1540_v50 = vld [vmem:[%s3100_s1 + $0xf0] sm:$0xff]  ;;  %v1541_v51 = vld [vmem:[%s3100_s1 + $0xf8] sm:$0xff]  ;;  %v2869_v53 = vpack.c.bf16 %v409_v48, %v408_v47  ;;  %v410_v54 = vld [vmem:[#allocation4 + $0x10] sm:$0xff] }
  0x41   : > { %2237 = vmatprep.subr.bf16.mxu0 %v2604_v4  ;;  %v411_v55 = vld [vmem:[#allocation4 + $0x18] sm:$0xff]  ;;  %v2873_v56 = vpack.c.bf16 %v1541_v51, %v1540_v50  ;;  %v412_v58 = vld [vmem:[#allocation4 + $0x20] sm:$0xff]  ;;  %v413_v59 = vld [vmem:[#allocation4 + $0x28] sm:$0xff] }
  0x42   : > { %2260 = vmatpush3.bf16.msra.mxu1 %v2785_v25  ;;  %v2877_v57 = vpack.c.bf16 %v411_v55, %v410_v54  ;;  %v407_v60 = vld [vmem:[#allocation2 + $0x8] sm:$0xff]  ;;  %v2885_v61 = vpack.c.bf16 %v413_v59, %v412_v58  ;;  %v414_v62 = vld [vmem:[#allocation4 + $0x30] sm:$0xff]  ;;  %v416_v1 = vld [vmem:[#allocation4 + $0x40] sm:$0xff] }
  0x43   : > { %2261 = vmatprep.subr.bf16.mxu1 %v2604_v4  ;;  %v415_v63 = vld [vmem:[#allocation4 + $0x38] sm:$0xff]  ;;  %v417_v2 = vld [vmem:[#allocation4 + $0x48] sm:$0xff]  ;;  %v418_v6 = vld [vmem:[#allocation4 + $0x50] sm:$0xff] }
  0x44   : > { %2239 = vmatpush3.bf16.msra.mxu0 %v2775_v22  ;;  %v2893_v0 = vpack.c.bf16 %v415_v63, %v414_v62  ;;  %v2899_v3 = vpack.c.bf16 %v417_v2, %v416_v1  ;;  %v419_v9 = vld [vmem:[#allocation4 + $0x58] sm:$0xff]  ;;  %v420_v11 = vld [vmem:[#allocation4 + $0x60] sm:$0xff]  ;;  %v421_v12 = vld [vmem:[#allocation4 + $0x68] sm:$0xff]  ;;  %v1421_v62 = vlaneseq (!%p1597_p4)  ;;  %v2607_v1 = vmov (!%p1597_p4), 0.0  }
  0x45   : > { %2240 = vmatprep.subr.bf16.mxu0 %v2604_v4  ;;  %v2916_v10 = vpack.c.bf16 %v419_v9, %v418_v6  ;;  %v2920_v13 = vpack.c.bf16 %v421_v12, %v420_v11  ;;  %v422_v14 = vld [vmem:[#allocation4 + $0x70] sm:$0xff]  ;;  %v423_v17 = vld [vmem:[#allocation4 + $0x78] sm:$0xff]  ;;  %v1561_v58 = vld [vmem:[%s2706_s28 + $0x10] sm:$0xff] }
  0x46   : > { %2263 = vmatpush3.bf16.msra.mxu1 %v2805_v31  ;;  %v2923_v18 = vpack.c.bf16 %v423_v17, %v422_v14  ;;  %v316_v20 = vld [vmem:[%s2706_s28] sm:$0xff]  ;;  %v1543_v30 = vld [vmem:[%s2706_s28 + $0x8] sm:$0xff]  ;;  %v1422_v63 = vshrl.u32 (!%p1597_p4), %v1421_v62, 7 }
  0x47   : > { %2264 = vmatprep.subr.bf16.mxu1 %v2604_v4  ;;  %v2969_v33 = vld [vmem:[%s3102_s3] ss:$0 sm:$0xff] }
  0x48   : > { %2242 = vmatpush3.bf16.msra.mxu0 %v2795_v28  ;;  %vm1423_vm1 = vcmp.lt.s32.totalorder (!%p1597_p4), %v1422_v63, 4 }
  0x49   : > { %2243 = vmatprep.subr.bf16.mxu0 %v2604_v4  ;;  %v1598_v2 = vsel (!%p1597_p4), %vm1423_vm1, 1.0, %v2607_v1 }
  0x4a   : > { %2266 = vmatpush3.bf16.msra.mxu1 %v2825_v37 }
  0x4b   : > { %2267 = vmatprep.subr.bf16.mxu1 %v2604_v4 }
  0x4c   : > { %2245 = vmatpush3.bf16.msra.mxu0 %v2815_v34 }
  0x4d   : > { %2246 = vmatprep.subr.bf16.mxu0 %v2604_v4 }
  0x4e   : > { %2269 = vmatpush3.bf16.msra.mxu1 %v2845_v43 }
  0x4f   : > { %2270 = vmatprep.subr.bf16.mxu1 %v2604_v4 }
  0x50   : > { %2248 = vmatpush3.bf16.msra.mxu0 %v2835_v40 }
  0x51   : > { %2249 = vmatprep.subr.bf16.mxu0 %v2604_v4 }
  0x52   : > { %2272 = vmatpush3.bf16.msra.mxu1 %v2859_v49 }
  0x53   : > { %2273 = vmatprep.subr.bf16.mxu1 %v2604_v4 }
  0x54   : > { %2251 = vmatpush3.bf16.msra.mxu0 %v2855_v46 }
  0x55   : > { %2276 = vmatprep.subr.bf16.mxu0 %v2604_v4 }
  0x56   : > { %2275 = vmatpush3.bf16.msra.mxu1 %v2873_v56 }
  0x57   : > { %1841 = vmatmul.mubr.f32.vlgmr.msra.gmra.mrb[0].mxu0 %v315_v52  ;;  %2300 = vmatprep.subr.bf16.mxu1 %v2604_v4 }
  0x58   : > { %2278 = vmatpush3.bf16.msra.mxu0 %v2869_v53  ;;  %1910 = vmatprep.mubr.msk.f32.mxu0 %vm2605_vm0, %v2606_v7 }
  0x59   : > { %2279 = vmatprep.subr.bf16.mxu0 %v2604_v4  ;;  %1876 = vmatmul.mubr.f32.vlgmr.msra.gmra.mrb[0].mxu1 %v407_v60 }
  0x5a   : > { %2302 = vmatpush3.bf16.msra.mxu1 %v2720_v5  ;;  %1945 = vmatprep.mubr.msk.f32.mxu1 %vm2605_vm0, %v2606_v7 }
  0x5b   : > { %2303 = vmatprep.subr.bf16.mxu1 %v2604_v4 }
  0x5c   : > { %2281 = vmatpush3.bf16.msra.mxu0 %v2877_v57 }
  0x5d   : > { %2282 = vmatprep.subr.bf16.mxu0 %v2604_v4 }
  0x5e   : > { %2305 = vmatpush3.bf16.msra.mxu1 %v2731_v8 }
  0x5f   : > { %2306 = vmatprep.subr.bf16.mxu1 %v2604_v4 }
  0x60   : > { %2284 = vmatpush3.bf16.msra.mxu0 %v2885_v61 }
  0x61   : > { %2285 = vmatprep.subr.bf16.mxu0 %v2604_v4 }
  0x62   : > { %2308 = vmatpush3.bf16.msra.mxu1 %v2753_v15 }
  0x63   : > { %2309 = vmatprep.subr.bf16.mxu1 %v2604_v4 }
  0x64   : > { %2287 = vmatpush3.bf16.msra.mxu0 %v2893_v0 }
  0x65   : > { %2288 = vmatprep.subr.bf16.mxu0 %v2604_v4 }
  0x66   : > { %2311 = vmatpush3.bf16.msra.mxu1 %v2775_v22 }
  0x67   : > { %2312 = vmatprep.subr.bf16.mxu1 %v2604_v4 }
  0x68   : > { %2290 = vmatpush3.bf16.msra.mxu0 %v2899_v3 }
  0x69   : > { %2291 = vmatprep.subr.bf16.mxu0 %v2604_v4 }
  0x6a   : > { %2314 = vmatpush3.bf16.msra.mxu1 %v2795_v28 }
  0x6b   : > { %2315 = vmatprep.subr.bf16.mxu1 %v2604_v4 }
  0x6c   : > { %2293 = vmatpush3.bf16.msra.mxu0 %v2916_v10 }
  0x6d   : > { %2294 = vmatprep.subr.bf16.mxu0 %v2604_v4 }
  0x6e   : > { %2317 = vmatpush3.bf16.msra.mxu1 %v2815_v34 }
  0x6f   : > { %2318 = vmatprep.subr.bf16.mxu1 %v2604_v4 }
  0x70   : > { %2296 = vmatpush3.bf16.msra.mxu0 %v2920_v13 }
  0x71   : > { %2297 = vmatprep.subr.bf16.mxu0 %v2604_v4 }
  0x72   : > { %2320 = vmatpush3.bf16.msra.mxu1 %v2835_v40 }
  0x73   : > { %2321 = vmatprep.subr.bf16.mxu1 %v2604_v4 }
  0x74   : > { %2299 = vmatpush3.bf16.msra.mxu0 %v2923_v18 }
  0x75   : > { %2324 = vmatprep.subr.bf16.mxu0 %v2604_v4 }
  0x76   : > { %2323 = vmatpush3.bf16.msra.mxu1 %v2855_v46 }
  0x77   : > { %2348 = vmatprep.subr.bf16.mxu1 %v2604_v4 }
 0x12a   : > { %v399_v21 = vpop.f32.mrb[0].mxu0 }
 0x12b   : > { %v403_v23 = vadd.f32 %v399_v21, %v316_v20  ;;  %v1842_v24 = vpop.f32.mrb[1].mxu0 }
 0x12c   : > { %v507_v26 = vpop.f32.mrb[0].mxu1 }
 0x12d   : > { %2542 = vtanh.f32 %v403_v23  ;;  %v1877_v27 = vpop.f32.mrb[1].mxu1 }
 0x137   : > { %v2543_v29 = vpop.eup %2542 }
 0x138   : > { %1911 = vmatmul.mubr.f32.vlgmr.msra.gmra.mrb[2].mxu0 %v2543_v29  ;;  %1946 = vmatmul.mubr.f32.vlgmr.msra.gmra.mrb[2].mxu1 %v2543_v29 }
 0x139   : > { %2350 = vmatpush3.bf16.msra.mxu1 %v2869_v53  ;;  %2326 = vmatpush3.bf16.msra.mxu0 %v2755_v16 }
 0x13a   : > { %2351 = vmatprep.subr.bf16.mxu1 %v2604_v4  ;;  %2327 = vmatprep.subr.bf16.mxu0 %v2604_v4 }
 0x13b   : > { %2015 = vmatprep.mubr.msk.f32.mxu1 %vm2605_vm0, %v2606_v7  ;;  %1980 = vmatprep.mubr.msk.f32.mxu0 %vm2605_vm0, %v2606_v7 }
 0x13d   : > { %2353 = vmatpush3.bf16.msra.mxu1 %v2877_v57  ;;  %2329 = vmatpush3.bf16.msra.mxu0 %v2765_v19 }
 0x13e   : > { %2354 = vmatprep.subr.bf16.mxu1 %v2604_v4  ;;  %2330 = vmatprep.subr.bf16.mxu0 %v2604_v4 }
 0x141   : > { %2356 = vmatpush3.bf16.msra.mxu1 %v2885_v61  ;;  %2332 = vmatpush3.bf16.msra.mxu0 %v2785_v25 }
 0x142   : > { %2357 = vmatprep.subr.bf16.mxu1 %v2604_v4  ;;  %2333 = vmatprep.subr.bf16.mxu0 %v2604_v4 }
 0x145   : > { %2359 = vmatpush3.bf16.msra.mxu1 %v2893_v0  ;;  %2335 = vmatpush3.bf16.msra.mxu0 %v2805_v31 }
 0x146   : > { %2360 = vmatprep.subr.bf16.mxu1 %v2604_v4  ;;  %2336 = vmatprep.subr.bf16.mxu0 %v2604_v4 }
 0x149   : > { %2362 = vmatpush3.bf16.msra.mxu1 %v2899_v3  ;;  %2338 = vmatpush3.bf16.msra.mxu0 %v2825_v37 }
 0x14a   : > { %2363 = vmatprep.subr.bf16.mxu1 %v2604_v4  ;;  %2339 = vmatprep.subr.bf16.mxu0 %v2604_v4 }
 0x14d   : > { %2365 = vmatpush3.bf16.msra.mxu1 %v2916_v10  ;;  %2341 = vmatpush3.bf16.msra.mxu0 %v2845_v43 }
 0x14e   : > { %2366 = vmatprep.subr.bf16.mxu1 %v2604_v4  ;;  %2342 = vmatprep.subr.bf16.mxu0 %v2604_v4 }
 0x151   : > { %2368 = vmatpush3.bf16.msra.mxu1 %v2920_v13  ;;  %2344 = vmatpush3.bf16.msra.mxu0 %v2859_v49 }
 0x152   : > { %2369 = vmatprep.subr.bf16.mxu1 %v2604_v4  ;;  %2345 = vmatprep.subr.bf16.mxu0 %v2604_v4 }
 0x155   : > { %2371 = vmatpush3.bf16.msra.mxu1 %v2923_v18  ;;  %2347 = vmatpush3.bf16.msra.mxu0 %v2873_v56 }
 0x156   : > { %2372 = vmatprep.subr.bf16.mxu0 %v2604_v4  ;;  %2396 = vmatprep.subr.bf16.mxu1 %v2604_v4 }
 0x20b   : > { %v577_v32 = vpop.f32.mrb[2].mxu0  ;;  %v676_v35 = vpop.f32.mrb[2].mxu1 }
 0x20c   : > { %v578_v36 = vadd.f32 %v577_v32, %v507_v26  ;;  %v1912_v38 = vpop.f32.mrb[3].mxu0  ;;  %v680_v39 = vadd.f32 %v1543_v30, %v676_v35  ;;  %v1947_v41 = vpop.f32.mrb[3].mxu1  ;;  %v1599_v35 = vld [vmem:[%s3103_s4] ss:$0 sm:$0xff] (!%p1597_p4) }
 0x20d   : > { %v1600_v38 = vld [vmem:[%s3104_s5] ss:$0 sm:$0xff] (!%p1597_p4) }
 0x20e   : > { %v588_v42 = vadd.f32 %v2969_v33, %v578_v36  ;;  %2544 = vtanh.f32 %v680_v39  ;;  %v1601_v41 = vld [vmem:[%s3105_s6] ss:$0 sm:$0xff] (!%p1597_p4) }
 0x210   : > { %2546 = vtanh.f32 %v588_v42 }
 0x218   : > { %v2545_v44 = vpop.eup %2544 }
 0x219   : > { %2016 = vmatmul.mubr.f32.vlgmr.msra.gmra.mrb[4].mxu1 %v2545_v44 }
 0x21a   : > { %v2547_v45 = vpop.eup %2546  ;;  %2398 = vmatpush3.bf16.msra.mxu1 %v2755_v16  ;;  %2085 = vmatprep.mubr.msk.f32.mxu1 %vm2605_vm0, %v2606_v7 }
 0x21b   : > { %1981 = vmatmul.mubr.f32.vlgmr.msra.gmra.mrb[4].mxu0 %v2547_v45  ;;  %2399 = vmatprep.subr.bf16.mxu1 %v2604_v4  ;;  %v1474_v45 = vstv (!%p1597_p4), %s1473_s18 }
 0x21c   : > { %2374 = vmatpush3.bf16.msra.mxu0 %v2720_v5  ;;  %2050 = vmatprep.mubr.msk.f32.mxu0 %vm2605_vm0, %v2606_v7 }
 0x21d   : > { %2375 = vmatprep.subr.bf16.mxu0 %v2604_v4 }
 0x21e   : > { %2401 = vmatpush3.bf16.msra.mxu1 %v2765_v19 }
 0x21f   : > { %2402 = vmatprep.subr.bf16.mxu1 %v2604_v4 }
 0x220   : > { %2377 = vmatpush3.bf16.msra.mxu0 %v2731_v8 }
 0x221   : > { %2378 = vmatprep.subr.bf16.mxu0 %v2604_v4 }
 0x222   : > { %2404 = vmatpush3.bf16.msra.mxu1 %v2785_v25 }
 0x223   : > { %2405 = vmatprep.subr.bf16.mxu1 %v2604_v4 }
 0x224   : > { %2380 = vmatpush3.bf16.msra.mxu0 %v2753_v15 }
 0x225   : > { %2381 = vmatprep.subr.bf16.mxu0 %v2604_v4 }
 0x226   : > { %2407 = vmatpush3.bf16.msra.mxu1 %v2805_v31 }
 0x227   : > { %2408 = vmatprep.subr.bf16.mxu1 %v2604_v4 }
 0x228   : > { %2383 = vmatpush3.bf16.msra.mxu0 %v2775_v22 }
 0x229   : > { %2384 = vmatprep.subr.bf16.mxu0 %v2604_v4 }
 0x22a   : > { %2410 = vmatpush3.bf16.msra.mxu1 %v2825_v37 }
 0x22b   : > { %2411 = vmatprep.subr.bf16.mxu1 %v2604_v4 }
 0x22c   : > { %2386 = vmatpush3.bf16.msra.mxu0 %v2795_v28 }
 0x22d   : > { %2387 = vmatprep.subr.bf16.mxu0 %v2604_v4 }
 0x22e   : > { %2413 = vmatpush3.bf16.msra.mxu1 %v2845_v43 }
 0x22f   : > { %2414 = vmatprep.subr.bf16.mxu1 %v2604_v4 }
 0x230   : > { %2389 = vmatpush3.bf16.msra.mxu0 %v2815_v34 }
 0x231   : > { %2390 = vmatprep.subr.bf16.mxu0 %v2604_v4 }
 0x232   : > { %2416 = vmatpush3.bf16.msra.mxu1 %v2859_v49 }
 0x233   : > { %2417 = vmatprep.subr.bf16.mxu1 %v2604_v4 }
 0x234   : > { %2392 = vmatpush3.bf16.msra.mxu0 %v2835_v40 }
 0x235   : > { %2393 = vmatprep.subr.bf16.mxu0 %v2604_v4 }
 0x236   : > { %2419 = vmatpush3.bf16.msra.mxu1 %v2873_v56 }
 0x237   : > { %2444 = vmatprep.subr.bf16.mxu1 %v2604_v4 }
 0x238   : > { %2395 = vmatpush3.bf16.msra.mxu0 %v2855_v46 }
 0x239   : > { %2420 = vmatprep.subr.bf16.mxu0 %v2604_v4 }
 0x23b   : > { %2051 = vmatmul.mubr.f32.vlgmr.msra.gmra.mrb[6].mxu0 %v2545_v44 }
 0x23c   : > { %2422 = vmatpush3.bf16.msra.mxu0 %v2869_v53  ;;  %2120 = vmatprep.mubr.msk.f32.mxu0 %vm2605_vm0, %v2606_v7 }
 0x23d   : > { %2423 = vmatprep.subr.bf16.mxu0 %v2604_v4 }
 0x240   : > { %2425 = vmatpush3.bf16.msra.mxu0 %v2877_v57 }
 0x241   : > { %2426 = vmatprep.subr.bf16.mxu0 %v2604_v4 }
 0x244   : > { %2428 = vmatpush3.bf16.msra.mxu0 %v2885_v61 }
 0x245   : > { %2429 = vmatprep.subr.bf16.mxu0 %v2604_v4 }
 0x248   : > { %2431 = vmatpush3.bf16.msra.mxu0 %v2893_v0 }
 0x249   : > { %2432 = vmatprep.subr.bf16.mxu0 %v2604_v4 }
 0x24c   : > { %2434 = vmatpush3.bf16.msra.mxu0 %v2899_v3 }
 0x24d   : > { %2435 = vmatprep.subr.bf16.mxu0 %v2604_v4 }
 0x250   : > { %2437 = vmatpush3.bf16.msra.mxu0 %v2916_v10 }
 0x251   : > { %2438 = vmatprep.subr.bf16.mxu0 %v2604_v4 }
 0x254   : > { %2440 = vmatpush3.bf16.msra.mxu0 %v2920_v13 }
 0x255   : > { %2441 = vmatprep.subr.bf16.mxu0 %v2604_v4 }
 0x258   : > { %2443 = vmatpush3.bf16.msra.mxu0 %v2923_v18 }
 0x259   : > { %2468 = vmatprep.subr.bf16.mxu0 %v2604_v4 }
 0x2ec   : > { %v852_v47 = vpop.f32.mrb[4].mxu1 }
 0x2ed   : > { %v2017_v48 = vpop.f32.mrb[5].mxu1 }
 0x2ee   : > { %v782_v50 = vpop.f32.mrb[4].mxu0 }
 0x2ef   : > { %v853_v51 = vadd.f32 %v852_v47, %v782_v50  ;;  %v1982_v52 = vpop.f32.mrb[5].mxu0 }
 0x2f1   : > { %v863_v54 = vadd.f32 %v2969_v33, %v853_v51 }
 0x2f3   : > { %2548 = vtanh.f32 %v863_v54 }
 0x2fd   : > { %v2549_v55 = vpop.eup %2548 }
 0x2fe   : > { %2086 = vmatmul.mubr.f32.vlgmr.msra.gmra.mrb[6].mxu1 %v2549_v55 }
 0x2ff   : > { %2446 = vmatpush3.bf16.msra.mxu1 %v2720_v5  ;;  %2155 = vmatprep.mubr.msk.f32.mxu1 %vm2605_vm0, %v2606_v7 }
 0x300   : > { %2447 = vmatprep.subr.bf16.mxu1 %v2604_v4 }
 0x303   : > { %2449 = vmatpush3.bf16.msra.mxu1 %v2731_v8 }
 0x304   : > { %2450 = vmatprep.subr.bf16.mxu1 %v2604_v4 }
 0x307   : > { %2452 = vmatpush3.bf16.msra.mxu1 %v2753_v15 }
 0x308   : > { %2453 = vmatprep.subr.bf16.mxu1 %v2604_v4 }
 0x30b   : > { %2455 = vmatpush3.bf16.msra.mxu1 %v2775_v22 }
 0x30c   : > { %2456 = vmatprep.subr.bf16.mxu1 %v2604_v4 }
 0x30e   : > { %v951_v59 = vpop.f32.mrb[6].mxu0 }
 0x30f   : > { %v955_v5 = vadd.f32 %v1561_v58, %v951_v59  ;;  %v2052_v60 = vpop.f32.mrb[7].mxu0  ;;  %2458 = vmatpush3.bf16.msra.mxu1 %v2795_v28 }
 0x310   : > { %2459 = vmatprep.subr.bf16.mxu1 %v2604_v4 }
 0x311   : > { %2550 = vtanh.f32 %v955_v5 }
 0x313   : > { %2461 = vmatpush3.bf16.msra.mxu1 %v2815_v34 }
 0x314   : > { %2462 = vmatprep.subr.bf16.mxu1 %v2604_v4 }
 0x317   : > { %2464 = vmatpush3.bf16.msra.mxu1 %v2835_v40 }
 0x318   : > { %2465 = vmatprep.subr.bf16.mxu1 %v2604_v4 }
 0x31b   : > { %v2551_v8 = vpop.eup %2550  ;;  %2467 = vmatpush3.bf16.msra.mxu1 %v2855_v46 }
 0x31c   : > { %2121 = vmatmul.mubr.f32.vlgmr.msra.gmra.mrb[8].mxu0 %v2551_v8  ;;  %2492 = vmatprep.subr.bf16.mxu1 %v2604_v4 }
 0x31d   : > { %2470 = vmatpush3.bf16.msra.mxu0 %v2755_v16  ;;  %2190 = vmatprep.mubr.msk.f32.mxu0 %vm2605_vm0, %v2606_v7 }
 0x31e   : > { %2156 = vmatmul.mubr.f32.vlgmr.msra.gmra.mrb[8].mxu1 %v2551_v8  ;;  %2471 = vmatprep.subr.bf16.mxu0 %v2604_v4 }
 0x31f   : > { %2494 = vmatpush3.bf16.msra.mxu1 %v2869_v53  ;;  %2225 = vmatprep.mubr.msk.f32.mxu1 %vm2605_vm0, %v2606_v7 }
 0x320   : > { %2495 = vmatprep.subr.bf16.mxu1 %v2604_v4 }
 0x321   : > { %2473 = vmatpush3.bf16.msra.mxu0 %v2765_v19  ;;  %v1579_v19 = vld [vmem:[%s2706_s28 + $0x18] sm:$0xff] }
 0x322   : > { %2474 = vmatprep.subr.bf16.mxu0 %v2604_v4 }
 0x323   : > { %2497 = vmatpush3.bf16.msra.mxu1 %v2877_v57 }
 0x324   : > { %2498 = vmatprep.subr.bf16.mxu1 %v2604_v4 }
 0x325   : > { %2476 = vmatpush3.bf16.msra.mxu0 %v2785_v25 }
 0x326   : > { %2477 = vmatprep.subr.bf16.mxu0 %v2604_v4 }
 0x327   : > { %2500 = vmatpush3.bf16.msra.mxu1 %v2885_v61 }
 0x328   : > { %2501 = vmatprep.subr.bf16.mxu1 %v2604_v4 }
 0x329   : > { %2479 = vmatpush3.bf16.msra.mxu0 %v2805_v31 }
 0x32a   : > { %2480 = vmatprep.subr.bf16.mxu0 %v2604_v4 }
 0x32b   : > { %2503 = vmatpush3.bf16.msra.mxu1 %v2893_v0 }
 0x32c   : > { %2504 = vmatprep.subr.bf16.mxu1 %v2604_v4 }
 0x32d   : > { %2482 = vmatpush3.bf16.msra.mxu0 %v2825_v37 }
 0x32e   : > { %2483 = vmatprep.subr.bf16.mxu0 %v2604_v4 }
 0x32f   : > { %2506 = vmatpush3.bf16.msra.mxu1 %v2899_v3 }
 0x330   : > { %2507 = vmatprep.subr.bf16.mxu1 %v2604_v4 }
 0x331   : > { %2485 = vmatpush3.bf16.msra.mxu0 %v2845_v43 }
 0x332   : > { %2486 = vmatprep.subr.bf16.mxu0 %v2604_v4 }
 0x333   : > { %2509 = vmatpush3.bf16.msra.mxu1 %v2916_v10 }
 0x334   : > { %2510 = vmatprep.subr.bf16.mxu1 %v2604_v4 }
 0x335   : > { %2488 = vmatpush3.bf16.msra.mxu0 %v2859_v49 }
 0x336   : > { %2489 = vmatprep.subr.bf16.mxu0 %v2604_v4 }
 0x337   : > { %2512 = vmatpush3.bf16.msra.mxu1 %v2920_v13 }
 0x338   : > { %2513 = vmatprep.subr.bf16.mxu1 %v2604_v4 }
 0x339   : > { %2491 = vmatpush3.bf16.msra.mxu0 %v2873_v56 }
 0x33b   : > { %2515 = vmatpush3.bf16.msra.mxu1 %v2923_v18 }
 0x3d1   : > { %v1057_v7 = vpop.f32.mrb[6].mxu1 }
 0x3d2   : > { %v2087_v15 = vpop.f32.mrb[7].mxu1 }
 0x3ef   : > { %v1127_v16 = vpop.f32.mrb[8].mxu0 }
 0x3f0   : > { %v1128_v22 = vadd.f32 %v1127_v16, %v1057_v7  ;;  %v2122_v25 = vpop.f32.mrb[9].mxu0 }
 0x3f1   : > { %v1226_v28 = vpop.f32.mrb[8].mxu1 }
 0x3f2   : > { %v1138_v31 = vadd.f32 %v2969_v33, %v1128_v22  ;;  %v1230_v34 = vadd.f32 %v1579_v19, %v1226_v28  ;;  %v2157_v37 = vpop.f32.mrb[9].mxu1 }
 0x3f4   : > { %2552 = vtanh.f32 %v1138_v31 }
 0x3f5   : > { %2554 = vtanh.f32 %v1230_v34 }
 0x3fe   : > { %v2553_v40 = vpop.eup %2552 }
 0x3ff   : > { %v2555_v43 = vpop.eup %2554  ;;  %2191 = vmatmul.mubr.f32.vlgmr.msra.gmra.mrb[10].mxu0 %v2553_v40 }
 0x400   : > { %1232 = vst [vmem:[#allocation2] sm:$0xff] %v2555_v43  ;;  %2226 = vmatmul.mubr.f32.vlgmr.msra.gmra.mrb[10].mxu1 %v2555_v43 }
 0x4d2   : > { %v1332_v4 = vpop.f32.mrb[10].mxu0 }
 0x4d3   : > { %v1402_v46 = vpop.f32.mrb[10].mxu1  ;;  %v2192_v49 = vpop.f32.mrb[11].mxu0 }
 0x4d4   : > { %v1403_v53 = vadd.f32 %v1402_v46, %v1332_v4  ;;  %v2227_v56 = vpop.f32.mrb[11].mxu1 }
 0x4d6   : > { %v1413_v57 = vadd.f32 %v2969_v33, %v1403_v53 }
 0x4d8   : > { %2556 = vtanh.f32 %v1413_v57 }
 0x4dd   : > { %1419 = sbr.rel (%p1597_p4) target bundleno = 1461 (0x5b5), region = 64 }
 0x4e2   : > { %v2557_v61 = vpop.eup %2556 }
 0x4e3   : > { %1415 = vst [vmem:[#allocation2 + $0x8] sm:$0xff] %v2557_v61 }
 0x4ea   : > { %v1420_v0 = vld [vmem:[#allocation2 + $0x8] sm:$0xff] }
 0x4eb   : > { %v1426_v3 = vmul.f32 %v1598_v2, %v1420_v0 }
 0x4ed   : > { %v1427_v6 = vrot.slane %v1426_v3, 4 }
 0x4ef   : > { %v1428_v9 = vadd.f32 %v1427_v6, %v1426_v3 }
 0x4f1   : > { %v1429_v10 = vrot.slane %v1428_v9, 2 }
 0x4f3   : > { %v1430_v11 = vadd.f32 %v1429_v10, %v1428_v9 }
 0x4f5   : > { %v1431_v12 = vrot.slane %v1430_v11, 1 }
 0x4f7   : > { %v1432_v13 = vadd.f32 %v1431_v12, %v1430_v11 }
 0x4f9   : > { %v1433_v14 = vmul.f32 0.25, %v1432_v13 }
 0x4fb   : > { %v1434_v17 = vsub.f32 %v1420_v0, %v1433_v14 }
 0x4fd   : > { %v1435_v18 = vmul.f32 %v1598_v2, %v1434_v17 }
 0x4ff   : > { %v1436_v20 = vmul.f32 %v1435_v18, %v1435_v18 }
 0x501   : > { %v1437_v21 = vrot.slane %v1436_v20, 4 }
 0x503   : > { %v1438_v23 = vadd.f32 %v1437_v21, %v1436_v20 }
 0x505   : > { %v1439_v24 = vrot.slane %v1438_v23, 2 }
 0x507   : > { %v1440_v26 = vadd.f32 %v1439_v24, %v1438_v23 }
 0x509   : > { %v1441_v27 = vrot.slane %v1440_v26, 1 }
 0x50b   : > { %v1442_v29 = vadd.f32 %v1441_v27, %v1440_v26 }
 0x50d   : > { %v1443_v30 = vmul.f32 0.25, %v1442_v29 }
 0x50f   : > { %v1444_v32 = vadd.f32 1e-05, %v1443_v30 }
 0x511   : > { %2558 = vrsqrt.f32 %v1444_v32 }
 0x51b   : > { %v2559_v33 = vpop.eup %2558 }
 0x51c   : > { %v1446_v36 = vmul.f32 %v2559_v33, %v1434_v17 }
 0x51e   : > { %v1454_v39 = vmul.f32 %v1599_v35, %v1446_v36 }
 0x520   : > { %v1462_v42 = vadd.f32 %v1600_v38, %v1454_v39 }
 0x522   : > { %v1470_v44 = vmul.f32 %v1601_v41, %v1462_v42 }
 0x524   : > { %1471 = vadd.xlane.f32.xlu0 %v1470_v44 }
 0x5b1   : > { %v1472_v47 = vpop.xlane.xlu0 %1471 }
 0x5b2   : > { %v1475_v48 = vadd.f32 %v1474_v45, %v1472_v47 }
 0x5b4   : > { %1476 = vst [vmem:[%s3107_s8] sm:$0xff] %v1475_v48 }
 0x5b5 PF: > { %s20_s29 = sadd.s32 1, %s2598_s29  }
 0x5b6   : > { %p17_p6 = scmp.ge.s32.totalorder %s20_s29, 4  }
 0x5b8   :  { %19 = sbr.rel (!%p17_p6) target bundleno = 3 (0x3), region = 96 }
 0x5bf   :  { %1488 = vsyncpa [#allocation5], 1 }
 0x5c0   :  { %1490 = vsyncpa [#allocation5 + $0x1], 1 }

</bundles_post_ra>
